<compile_context>
chip_gen: v6e
topology: v6e:2x2x1
jax: 0.10.0
libtpu: 0.0.40
codegen_flags: <defaults>
</compile_context>

<pallas_src>
import functools

import jax
import jax.numpy as jnp
from jax.experimental import pallas as pl
from jax.experimental.pallas import tpu as pltpu


# ----------------------------------------------------------------------------
# Tiling helpers
# ----------------------------------------------------------------------------

def _default_tiles():
    """Per-generation matmul tile defaults (tm, tn, tk)."""
    try:
        kind = jax.devices()[0].device_kind.lower()
    except Exception:  # pragma: no cover - defensive
        kind = ""
    if "v5" in kind:
        # v5e: 4x 128x128 MXU, 128 MiB VMEM.
        return 128, 128, 512
    if "v6" in kind:
        # v6e: 2x 256x256 MXU, 128 MiB VMEM.
        return 256, 256, 512
    # v7x (and unknown): 2x 256x256 MXU but only 64 MiB VMEM -> smaller K tile.
    return 256, 256, 256


def _pick(dim, want):
    """Largest legal tile: `want` if it divides `dim`, else the full dim."""
    if dim % want == 0:
        return want
    return dim


def _vmem_limit(nbytes):
    """Explicit scoped-VMEM budget: 2x working set + headroom, clamped to
    [32 MiB, 64 MiB] so it is valid on every generation (v7x physical = 64)."""
    return int(min(max(2 * nbytes + (4 << 20), 32 << 20), 64 << 20))


# ----------------------------------------------------------------------------
# Pallas kernels
# ----------------------------------------------------------------------------

def _gelu(x):
    # tanh-approximation GELU (EUP tanh).
    # TODO(synk): HF BERT's default 'gelu' is the exact erf form; logits may
    # differ at ~1e-3 from a reference model using erf.
    c = jnp.float32(0.7978845608028654)  # sqrt(2/pi)
    return 0.5 * x * (1.0 + jnp.tanh(c * (x + 0.044715 * x * x * x)))


def _apply_act(y, activation):
    if activation == "gelu":
        return _gelu(y)
    if activation == "tanh":
        return jnp.tanh(y)
    if activation == "relu":
        return jnp.maximum(y, 0.0)
    return y


def linear_kernel_acc(x_ref, w_ref, b_ref, o_ref, acc_ref, *, activation):
    """Tiled matmul with f32 accumulator; bias + activation on last K step."""
    @pl.when(pl.program_id(2) == 0)
    def _():
        acc_ref[...] = jnp.zeros_like(acc_ref)

    acc_ref[...] += jnp.dot(x_ref[...], w_ref[...],
                            preferred_element_type=jnp.float32)

    @pl.when(pl.program_id(2) == pl.num_programs(2) - 1)
    def _():
        y = acc_ref[...] + b_ref[...].astype(jnp.float32)
        o_ref[...] = _apply_act(y, activation).astype(o_ref.dtype)


def linear_kernel_1k(x_ref, w_ref, b_ref, o_ref, *, activation):
    """Single-K-tile matmul: no scratch, fused bias + activation epilogue."""
    y = jnp.dot(x_ref[...], w_ref[...], preferred_element_type=jnp.float32)
    y = y + b_ref[...].astype(jnp.float32)
    o_ref[...] = _apply_act(y, activation).astype(o_ref.dtype)


def linear(x, w, b, activation=None, out_dtype=jnp.bfloat16):
    """x: [M, K] bf16, w: [K, N] bf16, b: [1, N] f32 -> [M, N] out_dtype."""
    M, K = x.shape
    N = w.shape[1]
    tm0, tn0, tk0 = _default_tiles()
    tm, tn, tk = _pick(M, tm0), _pick(N, tn0), _pick(K, tk0)
    est_bytes = 2 * (tm * tk + tk * tn + tm * tn) * 2 + tm * tn * 4 + tn * 8

    if K == tk:
        # K fits in one tile: skip the accumulator / reduction grid axis.
        kernel = functools.partial(linear_kernel_1k, activation=activation)
        return pl.pallas_call(
            kernel,
            out_shape=jax.ShapeDtypeStruct((M, N), out_dtype),
            grid=(M // tm, N // tn),
            in_specs=[
                pl.BlockSpec((tm, K), lambda i, j: (i, 0)),
                pl.BlockSpec((K, tn), lambda i, j: (0, j)),
                pl.BlockSpec((1, tn), lambda i, j: (0, j)),
            ],
            out_specs=pl.BlockSpec((tm, tn), lambda i, j: (i, j)),
            compiler_params=pltpu.CompilerParams(
                dimension_semantics=("parallel", "parallel"),
                vmem_limit_bytes=_vmem_limit(est_bytes)),
        )(x, w, b)

    kernel = functools.partial(linear_kernel_acc, activation=activation)
    return pl.pallas_call(
        kernel,
        out_shape=jax.ShapeDtypeStruct((M, N), out_dtype),
        grid=(M // tm, N // tn, K // tk),
        in_specs=[
            pl.BlockSpec((tm, tk), lambda i, j, k: (i, k)),
            pl.BlockSpec((tk, tn), lambda i, j, k: (k, j)),
            pl.BlockSpec((1, tn), lambda i, j, k: (0, j)),
        ],
        out_specs=pl.BlockSpec((tm, tn), lambda i, j, k: (i, j)),
        scratch_shapes=[pltpu.VMEM((tm, tn), jnp.float32)],
        compiler_params=pltpu.CompilerParams(
            dimension_semantics=("parallel", "parallel", "arbitrary"),
            vmem_limit_bytes=_vmem_limit(est_bytes)),
    )(x, w, b)


def _ln_core(x, g, b, eps):
    mu = jnp.mean(x, axis=-1, keepdims=True)
    xc = x - mu
    var = jnp.mean(xc * xc, axis=-1, keepdims=True)
    inv = jax.lax.rsqrt(var + eps)
    return xc * inv * g + b


def layernorm_kernel(x_ref, g_ref, b_ref, o_ref, *, eps):
    x = x_ref[...].astype(jnp.float32)
    o_ref[...] = _ln_core(x, g_ref[...], b_ref[...], eps).astype(o_ref.dtype)


def layernorm_residual_kernel(x_ref, y_ref, g_ref, b_ref, o_ref, *, eps):
    # Fused residual add + LayerNorm, all in f32 internally.
    x = x_ref[...].astype(jnp.float32) + y_ref[...].astype(jnp.float32)
    o_ref[...] = _ln_core(x, g_ref[...], b_ref[...], eps).astype(o_ref.dtype)


def _layernorm_call(kernel, row_args, gamma, beta, out_dtype):
    M, H = row_args[0].shape
    tm = _pick(M, 512)
    row_spec = pl.BlockSpec((tm, H), lambda i: (i, 0))
    vec_spec = pl.BlockSpec((1, H), lambda i: (0, 0))
    n_rows = len(row_args)
    return pl.pallas_call(
        kernel,
        out_shape=jax.ShapeDtypeStruct((M, H), out_dtype),
        grid=(M // tm,),
        in_specs=[row_spec] * n_rows + [vec_spec, vec_spec],
        out_specs=row_spec,
        compiler_params=pltpu.CompilerParams(
            dimension_semantics=("parallel",),
            vmem_limit_bytes=_vmem_limit((n_rows + 1) * tm * H * 4 * 2)),
    )(*row_args, gamma, beta)


def layernorm(x, gamma, beta, eps=1e-12, out_dtype=jnp.bfloat16):
    kernel = functools.partial(layernorm_kernel, eps=eps)
    return _layernorm_call(kernel, (x,), gamma, beta, out_dtype)


def layernorm_residual(x, y, gamma, beta, eps=1e-12, out_dtype=jnp.bfloat16):
    kernel = functools.partial(layernorm_residual_kernel, eps=eps)
    return _layernorm_call(kernel, (x, y), gamma, beta, out_dtype)


def attention_kernel(qkv_ref, m_ref, o_ref, *, nH, Dh, H, scale):
    """Per-batch attention on the fused [S, 3H] QKV slab (lane-dense layout).

    q/k/v live at lane offsets [0, H, 2H); heads are looped with static Dh
    slices so no wrapper-side slices/transposes are needed.
    """
    mask = m_ref[0]                                   # [1, S] additive, f32
    # TODO(synk): for long sequences (S >= ~1-2k) switch to an online-softmax
    # (flash) form tiled over the KV axis instead of the full [S, S] scores.
    for h in range(nH):
        lo = h * Dh
        qh = qkv_ref[0, :, lo:lo + Dh] * scale        # scale folded into q
        kh = qkv_ref[0, :, H + lo:H + lo + Dh]
        vh = qkv_ref[0, :, 2 * H + lo:2 * H + lo + Dh]
        s = jax.lax.dot_general(qh, kh, (((1,), (1,)), ((), ())),
                                preferred_element_type=jnp.float32) + mask
        s_max = jnp.max(s, axis=-1, keepdims=True)
        p = jnp.exp(s - s_max)
        p = p * pl.reciprocal(jnp.sum(p, axis=-1, keepdims=True), approx=True)
        ctx_h = jnp.dot(p.astype(vh.dtype), vh,
                        preferred_element_type=jnp.float32)
        o_ref[0, :, lo:lo + Dh] = ctx_h.astype(o_ref.dtype)


def attention(qkv, add_mask, *, nH):
    """qkv: [B, S, 3H] bf16 (fused Q|K|V); add_mask: [B, 1, S] f32.

    Returns the attention context [B, S, H] bf16.
    """
    B, S, H3 = qkv.shape
    H = H3 // 3
    Dh = H // nH
    scale = 1.0 / (Dh ** 0.5)
    kernel = functools.partial(attention_kernel, nH=nH, Dh=Dh, H=H, scale=scale)
    est_bytes = S * H3 * 2 + S * H * 2 + S * S * 4
    return pl.pallas_call(
        kernel,
        out_shape=jax.ShapeDtypeStruct((B, S, H), jnp.bfloat16),
        grid=(B,),
        in_specs=[
            pl.BlockSpec((1, S, H3), lambda b: (b, 0, 0)),
            pl.BlockSpec((1, 1, S), lambda b: (b, 0, 0)),
        ],
        out_specs=pl.BlockSpec((1, S, H), lambda b: (b, 0, 0)),
        compiler_params=pltpu.CompilerParams(
            dimension_semantics=("parallel",),
            vmem_limit_bytes=_vmem_limit(2 * est_bytes)),
    )(qkv, add_mask)


def head_kernel(x_ref, wp_ref, bp_ref, wc_ref, bc_ref, o_ref):
    """Fused pooler (tanh linear on CLS rows) + classifier Linear."""
    x = x_ref[...]
    pooled = jnp.tanh(jnp.dot(x, wp_ref[...],
                              preferred_element_type=jnp.float32)
                      + bp_ref[...])
    logits = jnp.dot(pooled.astype(wc_ref.dtype), wc_ref[...],
                     preferred_element_type=jnp.float32) + bc_ref[...]
    o_ref[...] = logits


def pooler_classifier_head(cls_rows, wp, bp, wc, bc):
    """cls_rows: [B, H] bf16 -> logits [B, num_classes] f32 (single block)."""
    B, H = cls_rows.shape
    C = wc.shape[1]
    return pl.pallas_call(
        head_kernel,
        out_shape=jax.ShapeDtypeStruct((B, C), jnp.float32),
        grid=(1,),
        in_specs=[
            pl.BlockSpec((B, H), lambda i: (0, 0)),
            pl.BlockSpec((H, H), lambda i: (0, 0)),
            pl.BlockSpec((1, H), lambda i: (0, 0)),
            pl.BlockSpec((H, C), lambda i: (0, 0)),
            pl.BlockSpec((1, C), lambda i: (0, 0)),
        ],
        out_specs=pl.BlockSpec((B, C), lambda i: (0, 0)),
        compiler_params=pltpu.CompilerParams(
            vmem_limit_bytes=_vmem_limit(B * H * 2 + H * H * 2 + H * C * 2)),
    )(cls_rows, wp, bp, wc, bc)


# ----------------------------------------------------------------------------
# Deterministic synthetic parameters (mini-BERT + classifier head)
# ----------------------------------------------------------------------------

def init_params(key, *, vocab, type_vocab, max_pos, H, nH, FFN, num_classes):
    keys = jax.random.split(key, 20)
    s = 0.02

    def w32(k, shape):
        return (s * jax.random.normal(k, shape)).astype(jnp.float32)

    def w16(k, shape):
        return (s * jax.random.normal(k, shape)).astype(jnp.bfloat16)

    p = {
        # embeddings (tables stay f32; gather is plain-JAX glue)
        "word_emb": w32(keys[0], (vocab, H)),
        "pos_emb": w32(keys[1], (max_pos, H)),
        "type_emb": w32(keys[2], (type_vocab, H)),
        "emb_ln_g": jnp.ones((1, H), jnp.float32),
        "emb_ln_b": jnp.zeros((1, H), jnp.float32),
        # encoder layer: fused QKV + output projection (bf16 matmul weights)
        "wqkv": w16(keys[3], (H, 3 * H)),
        "bqkv": jnp.zeros((1, 3 * H), jnp.float32),
        "wo": w16(keys[4], (H, H)), "bo": jnp.zeros((1, H), jnp.float32),
        "attn_ln_g": jnp.ones((1, H), jnp.float32),
        "attn_ln_b": jnp.zeros((1, H), jnp.float32),
        # encoder layer: FFN
        "w1": w16(keys[5], (H, FFN)), "b1": jnp.zeros((1, FFN), jnp.float32),
        "w2": w16(keys[6], (FFN, H)), "b2": jnp.zeros((1, H), jnp.float32),
        "ffn_ln_g": jnp.ones((1, H), jnp.float32),
        "ffn_ln_b": jnp.zeros((1, H), jnp.float32),
        # pooler
        "wp": w16(keys[7], (H, H)), "bp": jnp.zeros((1, H), jnp.float32),
        # classifier head (default: single Linear(H, num_classes, bias=True))
        "wc": w16(keys[8], (H, num_classes)),
        "bc": jnp.zeros((1, num_classes), jnp.float32),
    }
    return p


# ----------------------------------------------------------------------------
# Forward pass (glue in JAX, hot paths in Pallas)
# ----------------------------------------------------------------------------

def kobert_classifier_forward(params, input_ids, attention_mask, token_type_ids,
                              *, nH):
    # matches: input_ids.long(), token_type_ids.long(), attention_mask.float()
    input_ids = input_ids.astype(jnp.int32)
    token_type_ids = token_type_ids.astype(jnp.int32)
    attention_mask = attention_mask.astype(jnp.float32)

    B, S = input_ids.shape
    H = params["word_emb"].shape[1]

    # --- embeddings (gather is glue) ---
    pos = jnp.arange(S, dtype=jnp.int32)
    emb = (params["word_emb"][input_ids]
           + params["pos_emb"][pos][None, :, :]
           + params["type_emb"][token_type_ids])                 # [B, S, H] f32
    x = layernorm(emb.reshape(B * S, H),
                  params["emb_ln_g"], params["emb_ln_b"])        # bf16 [B*S, H]

    # --- self-attention (fused QKV projection, lane-dense [B, S, H] layout) ---
    qkv = linear(x, params["wqkv"], params["bqkv"])              # [B*S, 3H] bf16
    qkv = qkv.reshape(B, S, 3 * H)                               # no q/k/v copies

    add_mask = (1.0 - attention_mask)[:, None, :] * jnp.float32(-10000.0)
    ctx = attention(qkv, add_mask, nH=nH)                        # [B, S, H] bf16

    attn_out = linear(ctx.reshape(B * S, H), params["wo"], params["bo"])
    x2 = layernorm_residual(x, attn_out,
                            params["attn_ln_g"], params["attn_ln_b"])

    # --- FFN ---
    h = linear(x2, params["w1"], params["b1"], activation="gelu")
    h = linear(h, params["w2"], params["b2"])
    x3 = layernorm_residual(x2, h, params["ffn_ln_g"], params["ffn_ln_b"])

    # --- fused pooler (tanh on CLS) + classifier head ---
    # (num_layers=1, dr_rate=None -> single Linear; dropout/batchnorm/layernorm
    #  branches of get_classifier are inactive under the default config.)
    cls = x3.reshape(B, S, H)[:, 0, :]                           # [B, H] bf16
    logits = pooler_classifier_head(cls, params["wp"], params["bp"],
                                    params["wc"], params["bc"])
    return logits                                                # [B, C] f32


# ----------------------------------------------------------------------------
# Demo
# ----------------------------------------------------------------------------

if __name__ == "__main__":
    B, S = 2, 8
    H, nH, FFN = 32, 4, 64
    vocab, type_vocab, num_classes = 50, 2, 4

    key = jax.random.PRNGKey(0)
    kp, ki, kt = jax.random.split(key, 3)

    params = init_params(kp, vocab=vocab, type_vocab=type_vocab, max_pos=S,
                         H=H, nH=nH, FFN=FFN, num_classes=num_classes)

    input_ids = jax.random.randint(ki, (B, S), 0, vocab, dtype=jnp.int32)
    token_type_ids = jax.random.randint(kt, (B, S), 0, type_vocab, dtype=jnp.int32)
    attention_mask = jnp.ones((B, S), dtype=jnp.float32)
    attention_mask = attention_mask.at[:, S - 2:].set(0.0)  # some padding

    fwd = jax.jit(functools.partial(kobert_classifier_forward, nH=nH))
    logits = fwd(params, input_ids, attention_mask, token_type_ids)
    jax.block_until_ready(logits)

    assert logits.shape == (B, num_classes)
    assert logits.dtype == jnp.float32
    assert bool(jnp.all(jnp.isfinite(logits)))
    print("KERNEL_OK")
</pallas_src>

<mosaic_0001>
module attributes {stable_mosaic.version = 11 : i64} {
  func.func @linear_kernel_1k(%arg0: i32, %arg1: i32, %arg2: memref<16x32xbf16, #tpu.memory_space<vmem>>, %arg3: memref<32x32xbf16, #tpu.memory_space<vmem>>, %arg4: memref<1x32xf32, #tpu.memory_space<vmem>>, %arg5: memref<16x32xbf16, #tpu.memory_space<vmem>>) attributes {dimension_semantics = [#tpu.dimension_semantics<parallel>, #tpu.dimension_semantics<parallel>], iteration_bounds = array<i64: 1, 1>, scalar_prefetch = 0 : i64, scratch_operands = 0 : i64, tpu.core_type = #tpu.core_type<tc>, window_params = [{transform_indices = @transform_0, window_bounds = array<i64: 16, 32>}, {transform_indices = @transform_1, window_bounds = array<i64: 32, 32>}, {transform_indices = @transform_2, window_bounds = array<i64: 1, 32>}, {transform_indices = @transform_3, window_bounds = array<i64: 16, 32>}]} {
    %c0 = arith.constant 0 : index
    %c0_0 = arith.constant 0 : index
    %0 = vector.load %arg2[%c0, %c0_0] : memref<16x32xbf16, #tpu.memory_space<vmem>>, vector<16x32xbf16>
    %c0_1 = arith.constant 0 : index
    %c0_2 = arith.constant 0 : index
    %1 = vector.load %arg3[%c0_1, %c0_2] : memref<32x32xbf16, #tpu.memory_space<vmem>>, vector<32x32xbf16>
    %cst = arith.constant dense<0.000000e+00> : vector<16x32xf32>
    %2 = tpu.matmul %0, %1, %cst {dimension_numbers = #tpu.dot_dimension_numbers<[1], [0], [0], [1], [0, 0, 1, 1], [], []>} : vector<16x32xbf16>, vector<32x32xbf16>, vector<16x32xf32> -> vector<16x32xf32>
    %c0_3 = arith.constant 0 : index
    %c0_4 = arith.constant 0 : index
    %3 = vector.load %arg4[%c0_3, %c0_4] : memref<1x32xf32, #tpu.memory_space<vmem>>, vector<1x32xf32>
    %4 = vector.broadcast %3 : vector<1x32xf32> to vector<16x32xf32>
    %5 = arith.addf %2, %4 : vector<16x32xf32>
    %6 = arith.truncf %5 : vector<16x32xf32> to vector<16x32xbf16>
    %c0_5 = arith.constant 0 : index
    %c0_6 = arith.constant 0 : index
    %7 = vector.load %arg5[%c0_5, %c0_6] : memref<16x32xbf16, #tpu.memory_space<vmem>>, vector<16x32xbf16>
    tpu.vector_store %arg5[%c0_5, %c0_6], %6 {strides = array<i32>} : memref<16x32xbf16, #tpu.memory_space<vmem>>, vector<16x32xbf16>,
    return
  }
  func.func @transform_0(%arg0: i32, %arg1: i32) -> (i32, i32) {
    %c0_i32 = arith.constant 0 : i32
    %c0_i32_0 = arith.constant 0 : i32
    return %arg0, %c0_i32 : i32, i32
  }
  func.func @transform_1(%arg0: i32, %arg1: i32) -> (i32, i32) {
    %c0_i32 = arith.constant 0 : i32
    %c0_i32_0 = arith.constant 0 : i32
    return %c0_i32, %arg1 : i32, i32
  }
  func.func @transform_2(%arg0: i32, %arg1: i32) -> (i32, i32) {
    %c0_i32 = arith.constant 0 : i32
    %c0_i32_0 = arith.constant 0 : i32
    return %c0_i32, %arg1 : i32, i32
  }
  func.func @transform_3(%arg0: i32, %arg1: i32) -> (i32, i32) {
    %c0_i32 = arith.constant 0 : i32
    return %arg0, %arg1 : i32, i32
  }
}

module attributes {stable_mosaic.version = 11 : i64} {
  func.func @linear_kernel_1k(%arg0: i32, %arg1: i32, %arg2: memref<16x32xbf16, #tpu.memory_space<vmem>>, %arg3: memref<32x96xbf16, #tpu.memory_space<vmem>>, %arg4: memref<1x96xf32, #tpu.memory_space<vmem>>, %arg5: memref<16x96xbf16, #tpu.memory_space<vmem>>) attributes {dimension_semantics = [#tpu.dimension_semantics<parallel>, #tpu.dimension_semantics<parallel>], iteration_bounds = array<i64: 1, 1>, scalar_prefetch = 0 : i64, scratch_operands = 0 : i64, tpu.core_type = #tpu.core_type<tc>, window_params = [{transform_indices = @transform_0, window_bounds = array<i64: 16, 32>}, {transform_indices = @transform_1, window_bounds = array<i64: 32, 96>}, {transform_indices = @transform_2, window_bounds = array<i64: 1, 96>}, {transform_indices = @transform_3, window_bounds = array<i64: 16, 96>}]} {
    %c0 = arith.constant 0 : index
    %c0_0 = arith.constant 0 : index
    %0 = vector.load %arg2[%c0, %c0_0] : memref<16x32xbf16, #tpu.memory_space<vmem>>, vector<16x32xbf16>
    %c0_1 = arith.constant 0 : index
    %c0_2 = arith.constant 0 : index
    %1 = vector.load %arg3[%c0_1, %c0_2] : memref<32x96xbf16, #tpu.memory_space<vmem>>, vector<32x96xbf16>
    %cst = arith.constant dense<0.000000e+00> : vector<16x96xf32>
    %2 = tpu.matmul %0, %1, %cst {dimension_numbers = #tpu.dot_dimension_numbers<[1], [0], [0], [1], [0, 0, 1, 1], [], []>} : vector<16x32xbf16>, vector<32x96xbf16>, vector<16x96xf32> -> vector<16x96xf32>
    %c0_3 = arith.constant 0 : index
    %c0_4 = arith.constant 0 : index
    %3 = vector.load %arg4[%c0_3, %c0_4] : memref<1x96xf32, #tpu.memory_space<vmem>>, vector<1x96xf32>
    %4 = vector.broadcast %3 : vector<1x96xf32> to vector<16x96xf32>
    %5 = arith.addf %2, %4 : vector<16x96xf32>
    %6 = arith.truncf %5 : vector<16x96xf32> to vector<16x96xbf16>
    %c0_5 = arith.constant 0 : index
    %c0_6 = arith.constant 0 : index
    %7 = vector.load %arg5[%c0_5, %c0_6] : memref<16x96xbf16, #tpu.memory_space<vmem>>, vector<16x96xbf16>
    tpu.vector_store %arg5[%c0_5, %c0_6], %6 {strides = array<i32>} : memref<16x96xbf16, #tpu.memory_space<vmem>>, vector<16x96xbf16>,
    return
  }
  func.func @transform_0(%arg0: i32, %arg1: i32) -> (i32, i32) {
    %c0_i32 = arith.constant 0 : i32
    %c0_i32_0 = arith.constant 0 : i32
    return %arg0, %c0_i32 : i32, i32
  }
  func.func @transform_1(%arg0: i32, %arg1: i32) -> (i32, i32) {
    %c0_i32 = arith.constant 0 : i32
    %c0_i32_0 = arith.constant 0 : i32
    return %c0_i32, %arg1 : i32, i32
  }
  func.func @transform_2(%arg0: i32, %arg1: i32) -> (i32, i32) {
    %c0_i32 = arith.constant 0 : i32
    %c0_i32_0 = arith.constant 0 : i32
    return %c0_i32, %arg1 : i32, i32
  }
  func.func @transform_3(%arg0: i32, %arg1: i32) -> (i32, i32) {
    %c0_i32 = arith.constant 0 : i32
    return %arg0, %arg1 : i32, i32
  }
}

module attributes {stable_mosaic.version = 11 : i64} {
  func.func @layernorm_kernel(%arg0: i32, %arg1: memref<16x32xf32, #tpu.memory_space<vmem>>, %arg2: memref<1x32xf32, #tpu.memory_space<vmem>>, %arg3: memref<1x32xf32, #tpu.memory_space<vmem>>, %arg4: memref<16x32xbf16, #tpu.memory_space<vmem>>) attributes {dimension_semantics = [#tpu.dimension_semantics<parallel>], iteration_bounds = array<i64: 1>, scalar_prefetch = 0 : i64, scratch_operands = 0 : i64, tpu.core_type = #tpu.core_type<tc>, window_params = [{transform_indices = @transform_0, window_bounds = array<i64: 16, 32>}, {pipeline_mode = #tpu.pipeline_mode<synchronous>, transform_indices = @transform_1, window_bounds = array<i64: 1, 32>}, {pipeline_mode = #tpu.pipeline_mode<synchronous>, transform_indices = @transform_2, window_bounds = array<i64: 1, 32>}, {transform_indices = @transform_3, window_bounds = array<i64: 16, 32>}]} {
    %c0 = arith.constant 0 : index
    %c0_0 = arith.constant 0 : index
    %0 = vector.load %arg1[%c0, %c0_0] : memref<16x32xf32, #tpu.memory_space<vmem>>, vector<16x32xf32>
    %c0_1 = arith.constant 0 : index
    %c0_2 = arith.constant 0 : index
    %1 = vector.load %arg2[%c0_1, %c0_2] : memref<1x32xf32, #tpu.memory_space<vmem>>, vector<1x32xf32>
    %c0_3 = arith.constant 0 : index
    %c0_4 = arith.constant 0 : index
    %2 = vector.load %arg3[%c0_3, %c0_4] : memref<1x32xf32, #tpu.memory_space<vmem>>, vector<1x32xf32>
    %cst = arith.constant dense<0.000000e+00> : vector<16xf32>
    %3 = vector.multi_reduction <add>, %0, %cst [1] : vector<16x32xf32> to vector<16xf32>
    %4 = vector.shape_cast %3 : vector<16xf32> to vector<16x1xf32>
    %cst_5 = arith.constant 3.200000e+01 : f32
    %5 = vector.broadcast %cst_5 : f32 to vector<16x1xf32>
    %6 = arith.divf %4, %5 : vector<16x1xf32>
    %7 = vector.broadcast %6 : vector<16x1xf32> to vector<16x32xf32>
    %8 = arith.subf %0, %7 : vector<16x32xf32>
    %9 = arith.mulf %8, %8 : vector<16x32xf32>
    %cst_6 = arith.constant dense<0.000000e+00> : vector<16xf32>
    %10 = vector.multi_reduction <add>, %9, %cst_6 [1] : vector<16x32xf32> to vector<16xf32>
    %11 = vector.shape_cast %10 : vector<16xf32> to vector<16x1xf32>
    %cst_7 = arith.constant 3.200000e+01 : f32
    %12 = vector.broadcast %cst_7 : f32 to vector<16x1xf32>
    %13 = arith.divf %11, %12 : vector<16x1xf32>
    %cst_8 = arith.constant 9.99999996E-13 : f32
    %14 = vector.broadcast %cst_8 : f32 to vector<16x1xf32>
    %15 = arith.addf %13, %14 : vector<16x1xf32>
    %16 = math.rsqrt %15 : vector<16x1xf32>
    %17 = vector.broadcast %16 : vector<16x1xf32> to vector<16x32xf32>
    %18 = arith.mulf %8, %17 : vector<16x32xf32>
    %19 = vector.broadcast %1 : vector<1x32xf32> to vector<16x32xf32>
    %20 = arith.mulf %18, %19 : vector<16x32xf32>
    %21 = vector.broadcast %2 : vector<1x32xf32> to vector<16x32xf32>
    %22 = arith.addf %20, %21 : vector<16x32xf32>
    %23 = arith.truncf %22 : vector<16x32xf32> to vector<16x32xbf16>
    %c0_9 = arith.constant 0 : index
    %c0_10 = arith.constant 0 : index
    %24 = vector.load %arg4[%c0_9, %c0_10] : memref<16x32xbf16, #tpu.memory_space<vmem>>, vector<16x32xbf16>
    tpu.vector_store %arg4[%c0_9, %c0_10], %23 {strides = array<i32>} : memref<16x32xbf16, #tpu.memory_space<vmem>>, vector<16x32xbf16>,
    return
  }
  func.func @transform_0(%arg0: i32) -> (i32, i32) {
    %c0_i32 = arith.constant 0 : i32
    %c0_i32_0 = arith.constant 0 : i32
    return %arg0, %c0_i32 : i32, i32
  }
  func.func @transform_1(%arg0: i32) -> (i32, i32) {
    %c0_i32 = arith.constant 0 : i32
    %c0_i32_0 = arith.constant 0 : i32
    %c0_i32_1 = arith.constant 0 : i32
    return %c0_i32, %c0_i32_0 : i32, i32
  }
  func.func @transform_2(%arg0: i32) -> (i32, i32) {
    %c0_i32 = arith.constant 0 : i32
    %c0_i32_0 = arith.constant 0 : i32
    %c0_i32_1 = arith.constant 0 : i32
    return %c0_i32, %c0_i32_0 : i32, i32
  }
  func.func @transform_3(%arg0: i32) -> (i32, i32) {
    %c0_i32 = arith.constant 0 : i32
    %c0_i32_0 = arith.constant 0 : i32
    return %arg0, %c0_i32 : i32, i32
  }
}

module attributes {stable_mosaic.version = 11 : i64} {
  func.func @attention_kernel(%arg0: i32, %arg1: memref<1x8x96xbf16, #tpu.memory_space<vmem>>, %arg2: memref<1x1x8xf32, #tpu.memory_space<vmem>>, %arg3: memref<1x8x32xbf16, #tpu.memory_space<vmem>>) attributes {dimension_semantics = [#tpu.dimension_semantics<parallel>], iteration_bounds = array<i64: 2>, scalar_prefetch = 0 : i64, scratch_operands = 0 : i64, tpu.core_type = #tpu.core_type<tc>, window_params = [{transform_indices = @transform_0, window_bounds = array<i64: 1, 8, 96>}, {transform_indices = @transform_1, window_bounds = array<i64: 1, 1, 8>}, {transform_indices = @transform_2, window_bounds = array<i64: 1, 8, 32>}]} {
    %c0 = arith.constant 0 : index
    %c0_0 = arith.constant 0 : index
    %c0_1 = arith.constant 0 : index
    %0 = vector.load %arg2[%c0, %c0_0, %c0_1] : memref<1x1x8xf32, #tpu.memory_space<vmem>>, vector<1x1x8xf32>
    %1 = vector.shape_cast %0 : vector<1x1x8xf32> to vector<1x8xf32>
    %c0_2 = arith.constant 0 : index
    %c0_3 = arith.constant 0 : index
    %c0_4 = arith.constant 0 : index
    %2 = vector.load %arg1[%c0_2, %c0_3, %c0_4] : memref<1x8x96xbf16, #tpu.memory_space<vmem>>, vector<1x8x8xbf16>
    %3 = vector.shape_cast %2 : vector<1x8x8xbf16> to vector<8x8xbf16>
    %cst = arith.constant 3.535160e-01 : bf16
    %4 = vector.broadcast %cst : bf16 to vector<8x8xbf16>
    %5 = arith.mulf %3, %4 : vector<8x8xbf16>
    %c0_5 = arith.constant 0 : index
    %c0_6 = arith.constant 0 : index
    %c32 = arith.constant 32 : index
    %6 = vector.load %arg1[%c0_5, %c0_6, %c32] : memref<1x8x96xbf16, #tpu.memory_space<vmem>>, vector<1x8x8xbf16>
    %7 = vector.shape_cast %6 : vector<1x8x8xbf16> to vector<8x8xbf16>
    %c0_7 = arith.constant 0 : index
    %c0_8 = arith.constant 0 : index
    %c64 = arith.constant 64 : index
    %8 = vector.load %arg1[%c0_7, %c0_8, %c64] : memref<1x8x96xbf16, #tpu.memory_space<vmem>>, vector<1x8x8xbf16>
    %9 = vector.shape_cast %8 : vector<1x8x8xbf16> to vector<8x8xbf16>
    %cst_9 = arith.constant dense<0.000000e+00> : vector<8x8xf32>
    %10 = tpu.matmul %5, %7, %cst_9 {dimension_numbers = #tpu.dot_dimension_numbers<[1], [1], [0], [0], [0, 0, 1, 0], [], []>} : vector<8x8xbf16>, vector<8x8xbf16>, vector<8x8xf32> -> vector<8x8xf32>
    %11 = vector.broadcast %1 : vector<1x8xf32> to vector<8x8xf32>
    %12 = arith.addf %10, %11 : vector<8x8xf32>
    %cst_10 = arith.constant dense<0xFF800000> : vector<8xf32>
    %13 = vector.multi_reduction <maximumf>, %12, %cst_10 [1] : vector<8x8xf32> to vector<8xf32>
    %14 = vector.shape_cast %13 : vector<8xf32> to vector<8x1xf32>
    %15 = vector.broadcast %14 : vector<8x1xf32> to vector<8x8xf32>
    %16 = arith.subf %12, %15 : vector<8x8xf32>
    %17 = math.exp %16 : vector<8x8xf32>
    %cst_11 = arith.constant dense<0.000000e+00> : vector<8xf32>
    %18 = vector.multi_reduction <add>, %17, %cst_11 [1] : vector<8x8xf32> to vector<8xf32>
    %19 = vector.shape_cast %18 : vector<8xf32> to vector<8x1xf32>
    %20 = tpu.reciprocal %19 {approx = true} : vector<8x1xf32> -> vector<8x1xf32>
    %21 = vector.broadcast %20 : vector<8x1xf32> to vector<8x8xf32>
    %22 = arith.mulf %17, %21 : vector<8x8xf32>
    %23 = arith.truncf %22 : vector<8x8xf32> to vector<8x8xbf16>
    %cst_12 = arith.constant dense<0.000000e+00> : vector<8x8xf32>
    %24 = tpu.matmul %23, %9, %cst_12 {dimension_numbers = #tpu.dot_dimension_numbers<[1], [0], [0], [1], [0, 0, 1, 1], [], []>} : vector<8x8xbf16>, vector<8x8xbf16>, vector<8x8xf32> -> vector<8x8xf32>
    %25 = arith.truncf %24 : vector<8x8xf32> to vector<8x8xbf16>
    %c0_13 = arith.constant 0 : index
    %c0_14 = arith.constant 0 : index
    %c0_15 = arith.constant 0 : index
    %26 = vector.load %arg3[%c0_13, %c0_14, %c0_15] : memref<1x8x32xbf16, #tpu.memory_space<vmem>>, vector<1x8x8xbf16>
    %27 = vector.shape_cast %26 : vector<1x8x8xbf16> to vector<8x8xbf16>
    %28 = vector.shape_cast %25 : vector<8x8xbf16> to vector<1x8x8xbf16>
    tpu.vector_store %arg3[%c0_13, %c0_14, %c0_15], %28 {strides = array<i32>} : memref<1x8x32xbf16, #tpu.memory_space<vmem>>, vector<1x8x8xbf16>,
    %c0_16 = arith.constant 0 : index
    %c0_17 = arith.constant 0 : index
    %c8 = arith.constant 8 : index
    %29 = vector.load %arg1[%c0_16, %c0_17, %c8] : memref<1x8x96xbf16, #tpu.memory_space<vmem>>, vector<1x8x8xbf16>
    %30 = vector.shape_cast %29 : vector<1x8x8xbf16> to vector<8x8xbf16>
    %cst_18 = arith.constant 3.535160e-01 : bf16
    %31 = vector.broadcast %cst_18 : bf16 to vector<8x8xbf16>
    %32 = arith.mulf %30, %31 : vector<8x8xbf16>
    %c0_19 = arith.constant 0 : index
    %c0_20 = arith.constant 0 : index
    %c40 = arith.constant 40 : index
    %33 = vector.load %arg1[%c0_19, %c0_20, %c40] : memref<1x8x96xbf16, #tpu.memory_space<vmem>>, vector<1x8x8xbf16>
    %34 = vector.shape_cast %33 : vector<1x8x8xbf16> to vector<8x8xbf16>
    %c0_21 = arith.constant 0 : index
    %c0_22 = arith.constant 0 : index
    %c72 = arith.constant 72 : index
    %35 = vector.load %arg1[%c0_21, %c0_22, %c72] : memref<1x8x96xbf16, #tpu.memory_space<vmem>>, vector<1x8x8xbf16>
    %36 = vector.shape_cast %35 : vector<1x8x8xbf16> to vector<8x8xbf16>
    %cst_23 = arith.constant dense<0.000000e+00> : vector<8x8xf32>
    %37 = tpu.matmul %32, %34, %cst_23 {dimension_numbers = #tpu.dot_dimension_numbers<[1], [1], [0], [0], [0, 0, 1, 0], [], []>} : vector<8x8xbf16>, vector<8x8xbf16>, vector<8x8xf32> -> vector<8x8xf32>
    %38 = vector.broadcast %1 : vector<1x8xf32> to vector<8x8xf32>
    %39 = arith.addf %37, %38 : vector<8x8xf32>
    %cst_24 = arith.constant dense<0xFF800000> : vector<8xf32>
    %40 = vector.multi_reduction <maximumf>, %39, %cst_24 [1] : vector<8x8xf32> to vector<8xf32>
    %41 = vector.shape_cast %40 : vector<8xf32> to vector<8x1xf32>
    %42 = vector.broadcast %41 : vector<8x1xf32> to vector<8x8xf32>
    %43 = arith.subf %39, %42 : vector<8x8xf32>
    %44 = math.exp %43 : vector<8x8xf32>
    %cst_25 = arith.constant dense<0.000000e+00> : vector<8xf32>
    %45 = vector.multi_reduction <add>, %44, %cst_25 [1] : vector<8x8xf32> to vector<8xf32>
    %46 = vector.shape_cast %45 : vector<8xf32> to vector<8x1xf32>
    %47 = tpu.reciprocal %46 {approx = true} : vector<8x1xf32> -> vector<8x1xf32>
    %48 = vector.broadcast %47 : vector<8x1xf32> to vector<8x8xf32>
    %49 = arith.mulf %44, %48 : vector<8x8xf32>
    %50 = arith.truncf %49 : vector<8x8xf32> to vector<8x8xbf16>
    %cst_26 = arith.constant dense<0.000000e+00> : vector<8x8xf32>
    %51 = tpu.matmul %50, %36, %cst_26 {dimension_numbers = #tpu.dot_dimension_numbers<[1], [0], [0], [1], [0, 0, 1, 1], [], []>} : vector<8x8xbf16>, vector<8x8xbf16>, vector<8x8xf32> -> vector<8x8xf32>
    %52 = arith.truncf %51 : vector<8x8xf32> to vector<8x8xbf16>
    %c0_27 = arith.constant 0 : index
    %c0_28 = arith.constant 0 : index
    %c8_29 = arith.constant 8 : index
    %53 = vector.load %arg3[%c0_27, %c0_28, %c8_29] : memref<1x8x32xbf16, #tpu.memory_space<vmem>>, vector<1x8x8xbf16>
    %54 = vector.shape_cast %53 : vector<1x8x8xbf16> to vector<8x8xbf16>
    %55 = vector.shape_cast %52 : vector<8x8xbf16> to vector<1x8x8xbf16>
    tpu.vector_store %arg3[%c0_27, %c0_28, %c8_29], %55 {strides = array<i32>} : memref<1x8x32xbf16, #tpu.memory_space<vmem>>, vector<1x8x8xbf16>,
    %c0_30 = arith.constant 0 : index
    %c0_31 = arith.constant 0 : index
    %c16 = arith.constant 16 : index
    %56 = vector.load %arg1[%c0_30, %c0_31, %c16] : memref<1x8x96xbf16, #tpu.memory_space<vmem>>, vector<1x8x8xbf16>
    %57 = vector.shape_cast %56 : vector<1x8x8xbf16> to vector<8x8xbf16>
    %cst_32 = arith.constant 3.535160e-01 : bf16
    %58 = vector.broadcast %cst_32 : bf16 to vector<8x8xbf16>
    %59 = arith.mulf %57, %58 : vector<8x8xbf16>
    %c0_33 = arith.constant 0 : index
    %c0_34 = arith.constant 0 : index
    %c48 = arith.constant 48 : index
    %60 = vector.load %arg1[%c0_33, %c0_34, %c48] : memref<1x8x96xbf16, #tpu.memory_space<vmem>>, vector<1x8x8xbf16>
    %61 = vector.shape_cast %60 : vector<1x8x8xbf16> to vector<8x8xbf16>
    %c0_35 = arith.constant 0 : index
    %c0_36 = arith.constant 0 : index
    %c80 = arith.constant 80 : index
    %62 = vector.load %arg1[%c0_35, %c0_36, %c80] : memref<1x8x96xbf16, #tpu.memory_space<vmem>>, vector<1x8x8xbf16>
    %63 = vector.shape_cast %62 : vector<1x8x8xbf16> to vector<8x8xbf16>
    %cst_37 = arith.constant dense<0.000000e+00> : vector<8x8xf32>
    %64 = tpu.matmul %59, %61, %cst_37 {dimension_numbers = #tpu.dot_dimension_numbers<[1], [1], [0], [0], [0, 0, 1, 0], [], []>} : vector<8x8xbf16>, vector<8x8xbf16>, vector<8x8xf32> -> vector<8x8xf32>
    %65 = vector.broadcast %1 : vector<1x8xf32> to vector<8x8xf32>
    %66 = arith.addf %64, %65 : vector<8x8xf32>
    %cst_38 = arith.constant dense<0xFF800000> : vector<8xf32>
    %67 = vector.multi_reduction <maximumf>, %66, %cst_38 [1] : vector<8x8xf32> to vector<8xf32>
    %68 = vector.shape_cast %67 : vector<8xf32> to vector<8x1xf32>
    %69 = vector.broadcast %68 : vector<8x1xf32> to vector<8x8xf32>
    %70 = arith.subf %66, %69 : vector<8x8xf32>
    %71 = math.exp %70 : vector<8x8xf32>
    %cst_39 = arith.constant dense<0.000000e+00> : vector<8xf32>
    %72 = vector.multi_reduction <add>, %71, %cst_39 [1] : vector<8x8xf32> to vector<8xf32>
    %73 = vector.shape_cast %72 : vector<8xf32> to vector<8x1xf32>
    %74 = tpu.reciprocal %73 {approx = true} : vector<8x1xf32> -> vector<8x1xf32>
    %75 = vector.broadcast %74 : vector<8x1xf32> to vector<8x8xf32>
    %76 = arith.mulf %71, %75 : vector<8x8xf32>
    %77 = arith.truncf %76 : vector<8x8xf32> to vector<8x8xbf16>
    %cst_40 = arith.constant dense<0.000000e+00> : vector<8x8xf32>
    %78 = tpu.matmul %77, %63, %cst_40 {dimension_numbers = #tpu.dot_dimension_numbers<[1], [0], [0], [1], [0, 0, 1, 1], [], []>} : vector<8x8xbf16>, vector<8x8xbf16>, vector<8x8xf32> -> vector<8x8xf32>
    %79 = arith.truncf %78 : vector<8x8xf32> to vector<8x8xbf16>
    %c0_41 = arith.constant 0 : index
    %c0_42 = arith.constant 0 : index
    %c16_43 = arith.constant 16 : index
    %80 = vector.load %arg3[%c0_41, %c0_42, %c16_43] : memref<1x8x32xbf16, #tpu.memory_space<vmem>>, vector<1x8x8xbf16>
    %81 = vector.shape_cast %80 : vector<1x8x8xbf16> to vector<8x8xbf16>
    %82 = vector.shape_cast %79 : vector<8x8xbf16> to vector<1x8x8xbf16>
    tpu.vector_store %arg3[%c0_41, %c0_42, %c16_43], %82 {strides = array<i32>} : memref<1x8x32xbf16, #tpu.memory_space<vmem>>, vector<1x8x8xbf16>,
    %c0_44 = arith.constant 0 : index
    %c0_45 = arith.constant 0 : index
    %c24 = arith.constant 24 : index
    %83 = vector.load %arg1[%c0_44, %c0_45, %c24] : memref<1x8x96xbf16, #tpu.memory_space<vmem>>, vector<1x8x8xbf16>
    %84 = vector.shape_cast %83 : vector<1x8x8xbf16> to vector<8x8xbf16>
    %cst_46 = arith.constant 3.535160e-01 : bf16
    %85 = vector.broadcast %cst_46 : bf16 to vector<8x8xbf16>
    %86 = arith.mulf %84, %85 : vector<8x8xbf16>
    %c0_47 = arith.constant 0 : index
    %c0_48 = arith.constant 0 : index
    %c56 = arith.constant 56 : index
    %87 = vector.load %arg1[%c0_47, %c0_48, %c56] : memref<1x8x96xbf16, #tpu.memory_space<vmem>>, vector<1x8x8xbf16>
    %88 = vector.shape_cast %87 : vector<1x8x8xbf16> to vector<8x8xbf16>
    %c0_49 = arith.constant 0 : index
    %c0_50 = arith.constant 0 : index
    %c88 = arith.constant 88 : index
    %89 = vector.load %arg1[%c0_49, %c0_50, %c88] : memref<1x8x96xbf16, #tpu.memory_space<vmem>>, vector<1x8x8xbf16>
    %90 = vector.shape_cast %89 : vector<1x8x8xbf16> to vector<8x8xbf16>
    %cst_51 = arith.constant dense<0.000000e+00> : vector<8x8xf32>
    %91 = tpu.matmul %86, %88, %cst_51 {dimension_numbers = #tpu.dot_dimension_numbers<[1], [1], [0], [0], [0, 0, 1, 0], [], []>} : vector<8x8xbf16>, vector<8x8xbf16>, vector<8x8xf32> -> vector<8x8xf32>
    %92 = vector.broadcast %1 : vector<1x8xf32> to vector<8x8xf32>
    %93 = arith.addf %91, %92 : vector<8x8xf32>
    %cst_52 = arith.constant dense<0xFF800000> : vector<8xf32>
    %94 = vector.multi_reduction <maximumf>, %93, %cst_52 [1] : vector<8x8xf32> to vector<8xf32>
    %95 = vector.shape_cast %94 : vector<8xf32> to vector<8x1xf32>
    %96 = vector.broadcast %95 : vector<8x1xf32> to vector<8x8xf32>
    %97 = arith.subf %93, %96 : vector<8x8xf32>
    %98 = math.exp %97 : vector<8x8xf32>
    %cst_53 = arith.constant dense<0.000000e+00> : vector<8xf32>
    %99 = vector.multi_reduction <add>, %98, %cst_53 [1] : vector<8x8xf32> to vector<8xf32>
    %100 = vector.shape_cast %99 : vector<8xf32> to vector<8x1xf32>
    %101 = tpu.reciprocal %100 {approx = true} : vector<8x1xf32> -> vector<8x1xf32>
    %102 = vector.broadcast %101 : vector<8x1xf32> to vector<8x8xf32>
    %103 = arith.mulf %98, %102 : vector<8x8xf32>
    %104 = arith.truncf %103 : vector<8x8xf32> to vector<8x8xbf16>
    %cst_54 = arith.constant dense<0.000000e+00> : vector<8x8xf32>
    %105 = tpu.matmul %104, %90, %cst_54 {dimension_numbers = #tpu.dot_dimension_numbers<[1], [0], [0], [1], [0, 0, 1, 1], [], []>} : vector<8x8xbf16>, vector<8x8xbf16>, vector<8x8xf32> -> vector<8x8xf32>
    %106 = arith.truncf %105 : vector<8x8xf32> to vector<8x8xbf16>
    %c0_55 = arith.constant 0 : index
    %c0_56 = arith.constant 0 : index
    %c24_57 = arith.constant 24 : index
    %107 = vector.load %arg3[%c0_55, %c0_56, %c24_57] : memref<1x8x32xbf16, #tpu.memory_space<vmem>>, vector<1x8x8xbf16>
    %108 = vector.shape_cast %107 : vector<1x8x8xbf16> to vector<8x8xbf16>
    %109 = vector.shape_cast %106 : vector<8x8xbf16> to vector<1x8x8xbf16>
    tpu.vector_store %arg3[%c0_55, %c0_56, %c24_57], %109 {strides = array<i32>} : memref<1x8x32xbf16, #tpu.memory_space<vmem>>, vector<1x8x8xbf16>,
    return
  }
  func.func @transform_0(%arg0: i32) -> (i32, i32, i32) {
    %c0_i32 = arith.constant 0 : i32
    %c0_i32_0 = arith.constant 0 : i32
    %c0_i32_1 = arith.constant 0 : i32
    return %arg0, %c0_i32, %c0_i32_0 : i32, i32, i32
  }
  func.func @transform_1(%arg0: i32) -> (i32, i32, i32) {
    %c0_i32 = arith.constant 0 : i32
    %c0_i32_0 = arith.constant 0 : i32
    %c0_i32_1 = arith.constant 0 : i32
    return %arg0, %c0_i32, %c0_i32_0 : i32, i32, i32
  }
  func.func @transform_2(%arg0: i32) -> (i32, i32, i32) {
    %c0_i32 = arith.constant 0 : i32
    %c0_i32_0 = arith.constant 0 : i32
    %c0_i32_1 = arith.constant 0 : i32
    return %arg0, %c0_i32, %c0_i32_0 : i32, i32, i32
  }
}

module attributes {stable_mosaic.version = 11 : i64} {
  func.func @layernorm_residual_kernel(%arg0: i32, %arg1: memref<16x32xbf16, #tpu.memory_space<vmem>>, %arg2: memref<16x32xbf16, #tpu.memory_space<vmem>>, %arg3: memref<1x32xf32, #tpu.memory_space<vmem>>, %arg4: memref<1x32xf32, #tpu.memory_space<vmem>>, %arg5: memref<16x32xbf16, #tpu.memory_space<vmem>>) attributes {dimension_semantics = [#tpu.dimension_semantics<parallel>], iteration_bounds = array<i64: 1>, scalar_prefetch = 0 : i64, scratch_operands = 0 : i64, tpu.core_type = #tpu.core_type<tc>, window_params = [{transform_indices = @transform_0, window_bounds = array<i64: 16, 32>}, {transform_indices = @transform_1, window_bounds = array<i64: 16, 32>}, {pipeline_mode = #tpu.pipeline_mode<synchronous>, transform_indices = @transform_2, window_bounds = array<i64: 1, 32>}, {pipeline_mode = #tpu.pipeline_mode<synchronous>, transform_indices = @transform_3, window_bounds = array<i64: 1, 32>}, {transform_indices = @transform_4, window_bounds = array<i64: 16, 32>}]} {
    %c0 = arith.constant 0 : index
    %c0_0 = arith.constant 0 : index
    %0 = vector.load %arg1[%c0, %c0_0] : memref<16x32xbf16, #tpu.memory_space<vmem>>, vector<16x32xbf16>
    %1 = arith.extf %0 : vector<16x32xbf16> to vector<16x32xf32>
    %c0_1 = arith.constant 0 : index
    %c0_2 = arith.constant 0 : index
    %2 = vector.load %arg2[%c0_1, %c0_2] : memref<16x32xbf16, #tpu.memory_space<vmem>>, vector<16x32xbf16>
    %3 = arith.extf %2 : vector<16x32xbf16> to vector<16x32xf32>
    %4 = arith.addf %1, %3 : vector<16x32xf32>
    %c0_3 = arith.constant 0 : index
    %c0_4 = arith.constant 0 : index
    %5 = vector.load %arg3[%c0_3, %c0_4] : memref<1x32xf32, #tpu.memory_space<vmem>>, vector<1x32xf32>
    %c0_5 = arith.constant 0 : index
    %c0_6 = arith.constant 0 : index
    %6 = vector.load %arg4[%c0_5, %c0_6] : memref<1x32xf32, #tpu.memory_space<vmem>>, vector<1x32xf32>
    %cst = arith.constant dense<0.000000e+00> : vector<16xf32>
    %7 = vector.multi_reduction <add>, %4, %cst [1] : vector<16x32xf32> to vector<16xf32>
    %8 = vector.shape_cast %7 : vector<16xf32> to vector<16x1xf32>
    %cst_7 = arith.constant 3.200000e+01 : f32
    %9 = vector.broadcast %cst_7 : f32 to vector<16x1xf32>
    %10 = arith.divf %8, %9 : vector<16x1xf32>
    %11 = vector.broadcast %10 : vector<16x1xf32> to vector<16x32xf32>
    %12 = arith.subf %4, %11 : vector<16x32xf32>
    %13 = arith.mulf %12, %12 : vector<16x32xf32>
    %cst_8 = arith.constant dense<0.000000e+00> : vector<16xf32>
    %14 = vector.multi_reduction <add>, %13, %cst_8 [1] : vector<16x32xf32> to vector<16xf32>
    %15 = vector.shape_cast %14 : vector<16xf32> to vector<16x1xf32>
    %cst_9 = arith.constant 3.200000e+01 : f32
    %16 = vector.broadcast %cst_9 : f32 to vector<16x1xf32>
    %17 = arith.divf %15, %16 : vector<16x1xf32>
    %cst_10 = arith.constant 9.99999996E-13 : f32
    %18 = vector.broadcast %cst_10 : f32 to vector<16x1xf32>
    %19 = arith.addf %17, %18 : vector<16x1xf32>
    %20 = math.rsqrt %19 : vector<16x1xf32>
    %21 = vector.broadcast %20 : vector<16x1xf32> to vector<16x32xf32>
    %22 = arith.mulf %12, %21 : vector<16x32xf32>
    %23 = vector.broadcast %5 : vector<1x32xf32> to vector<16x32xf32>
    %24 = arith.mulf %22, %23 : vector<16x32xf32>
    %25 = vector.broadcast %6 : vector<1x32xf32> to vector<16x32xf32>
    %26 = arith.addf %24, %25 : vector<16x32xf32>
    %27 = arith.truncf %26 : vector<16x32xf32> to vector<16x32xbf16>
    %c0_11 = arith.constant 0 : index
    %c0_12 = arith.constant 0 : index
    %28 = vector.load %arg5[%c0_11, %c0_12] : memref<16x32xbf16, #tpu.memory_space<vmem>>, vector<16x32xbf16>
    tpu.vector_store %arg5[%c0_11, %c0_12], %27 {strides = array<i32>} : memref<16x32xbf16, #tpu.memory_space<vmem>>, vector<16x32xbf16>,
    return
  }
  func.func @transform_0(%arg0: i32) -> (i32, i32) {
    %c0_i32 = arith.constant 0 : i32
    %c0_i32_0 = arith.constant 0 : i32
    return %arg0, %c0_i32 : i32, i32
  }
  func.func @transform_1(%arg0: i32) -> (i32, i32) {
    %c0_i32 = arith.constant 0 : i32
    %c0_i32_0 = arith.constant 0 : i32
    return %arg0, %c0_i32 : i32, i32
  }
  func.func @transform_2(%arg0: i32) -> (i32, i32) {
    %c0_i32 = arith.constant 0 : i32
    %c0_i32_0 = arith.constant 0 : i32
    %c0_i32_1 = arith.constant 0 : i32
    return %c0_i32, %c0_i32_0 : i32, i32
  }
  func.func @transform_3(%arg0: i32) -> (i32, i32) {
    %c0_i32 = arith.constant 0 : i32
    %c0_i32_0 = arith.constant 0 : i32
    %c0_i32_1 = arith.constant 0 : i32
    return %c0_i32, %c0_i32_0 : i32, i32
  }
  func.func @transform_4(%arg0: i32) -> (i32, i32) {
    %c0_i32 = arith.constant 0 : i32
    %c0_i32_0 = arith.constant 0 : i32
    return %arg0, %c0_i32 : i32, i32
  }
}

module attributes {stable_mosaic.version = 11 : i64} {
  func.func @linear_kernel_1k(%arg0: i32, %arg1: i32, %arg2: memref<16x32xbf16, #tpu.memory_space<vmem>>, %arg3: memref<32x64xbf16, #tpu.memory_space<vmem>>, %arg4: memref<1x64xf32, #tpu.memory_space<vmem>>, %arg5: memref<16x64xbf16, #tpu.memory_space<vmem>>) attributes {dimension_semantics = [#tpu.dimension_semantics<parallel>, #tpu.dimension_semantics<parallel>], iteration_bounds = array<i64: 1, 1>, scalar_prefetch = 0 : i64, scratch_operands = 0 : i64, tpu.core_type = #tpu.core_type<tc>, window_params = [{transform_indices = @transform_0, window_bounds = array<i64: 16, 32>}, {transform_indices = @transform_1, window_bounds = array<i64: 32, 64>}, {transform_indices = @transform_2, window_bounds = array<i64: 1, 64>}, {transform_indices = @transform_3, window_bounds = array<i64: 16, 64>}]} {
    %c0 = arith.constant 0 : index
    %c0_0 = arith.constant 0 : index
    %0 = vector.load %arg2[%c0, %c0_0] : memref<16x32xbf16, #tpu.memory_space<vmem>>, vector<16x32xbf16>
    %c0_1 = arith.constant 0 : index
    %c0_2 = arith.constant 0 : index
    %1 = vector.load %arg3[%c0_1, %c0_2] : memref<32x64xbf16, #tpu.memory_space<vmem>>, vector<32x64xbf16>
    %cst = arith.constant dense<0.000000e+00> : vector<16x64xf32>
    %2 = tpu.matmul %0, %1, %cst {dimension_numbers = #tpu.dot_dimension_numbers<[1], [0], [0], [1], [0, 0, 1, 1], [], []>} : vector<16x32xbf16>, vector<32x64xbf16>, vector<16x64xf32> -> vector<16x64xf32>
    %c0_3 = arith.constant 0 : index
    %c0_4 = arith.constant 0 : index
    %3 = vector.load %arg4[%c0_3, %c0_4] : memref<1x64xf32, #tpu.memory_space<vmem>>, vector<1x64xf32>
    %4 = vector.broadcast %3 : vector<1x64xf32> to vector<16x64xf32>
    %5 = arith.addf %2, %4 : vector<16x64xf32>
    %cst_5 = arith.constant 5.000000e-01 : f32
    %6 = vector.broadcast %cst_5 : f32 to vector<16x64xf32>
    %7 = arith.mulf %6, %5 : vector<16x64xf32>
    %cst_6 = arith.constant 4.471500e-02 : f32
    %8 = vector.broadcast %cst_6 : f32 to vector<16x64xf32>
    %9 = arith.mulf %8, %5 : vector<16x64xf32>
    %10 = arith.mulf %9, %5 : vector<16x64xf32>
    %11 = arith.mulf %10, %5 : vector<16x64xf32>
    %12 = arith.addf %5, %11 : vector<16x64xf32>
    %cst_7 = arith.constant 0.797884583 : f32
    %13 = vector.broadcast %cst_7 : f32 to vector<16x64xf32>
    %14 = arith.mulf %13, %12 : vector<16x64xf32>
    %15 = math.tanh %14 : vector<16x64xf32>
    %cst_8 = arith.constant 1.000000e+00 : f32
    %16 = vector.broadcast %cst_8 : f32 to vector<16x64xf32>
    %17 = arith.addf %16, %15 : vector<16x64xf32>
    %18 = arith.mulf %7, %17 : vector<16x64xf32>
    %19 = arith.truncf %18 : vector<16x64xf32> to vector<16x64xbf16>
    %c0_9 = arith.constant 0 : index
    %c0_10 = arith.constant 0 : index
    %20 = vector.load %arg5[%c0_9, %c0_10] : memref<16x64xbf16, #tpu.memory_space<vmem>>, vector<16x64xbf16>
    tpu.vector_store %arg5[%c0_9, %c0_10], %19 {strides = array<i32>} : memref<16x64xbf16, #tpu.memory_space<vmem>>, vector<16x64xbf16>,
    return
  }
  func.func @transform_0(%arg0: i32, %arg1: i32) -> (i32, i32) {
    %c0_i32 = arith.constant 0 : i32
    %c0_i32_0 = arith.constant 0 : i32
    return %arg0, %c0_i32 : i32, i32
  }
  func.func @transform_1(%arg0: i32, %arg1: i32) -> (i32, i32) {
    %c0_i32 = arith.constant 0 : i32
    %c0_i32_0 = arith.constant 0 : i32
    return %c0_i32, %arg1 : i32, i32
  }
  func.func @transform_2(%arg0: i32, %arg1: i32) -> (i32, i32) {
    %c0_i32 = arith.constant 0 : i32
    %c0_i32_0 = arith.constant 0 : i32
    return %c0_i32, %arg1 : i32, i32
  }
  func.func @transform_3(%arg0: i32, %arg1: i32) -> (i32, i32) {
    %c0_i32 = arith.constant 0 : i32
    return %arg0, %arg1 : i32, i32
  }
}

module attributes {stable_mosaic.version = 11 : i64} {
  func.func @linear_kernel_1k(%arg0: i32, %arg1: i32, %arg2: memref<16x64xbf16, #tpu.memory_space<vmem>>, %arg3: memref<64x32xbf16, #tpu.memory_space<vmem>>, %arg4: memref<1x32xf32, #tpu.memory_space<vmem>>, %arg5: memref<16x32xbf16, #tpu.memory_space<vmem>>) attributes {dimension_semantics = [#tpu.dimension_semantics<parallel>, #tpu.dimension_semantics<parallel>], iteration_bounds = array<i64: 1, 1>, scalar_prefetch = 0 : i64, scratch_operands = 0 : i64, tpu.core_type = #tpu.core_type<tc>, window_params = [{transform_indices = @transform_0, window_bounds = array<i64: 16, 64>}, {transform_indices = @transform_1, window_bounds = array<i64: 64, 32>}, {transform_indices = @transform_2, window_bounds = array<i64: 1, 32>}, {transform_indices = @transform_3, window_bounds = array<i64: 16, 32>}]} {
    %c0 = arith.constant 0 : index
    %c0_0 = arith.constant 0 : index
    %0 = vector.load %arg2[%c0, %c0_0] : memref<16x64xbf16, #tpu.memory_space<vmem>>, vector<16x64xbf16>
    %c0_1 = arith.constant 0 : index
    %c0_2 = arith.constant 0 : index
    %1 = vector.load %arg3[%c0_1, %c0_2] : memref<64x32xbf16, #tpu.memory_space<vmem>>, vector<64x32xbf16>
    %cst = arith.constant dense<0.000000e+00> : vector<16x32xf32>
    %2 = tpu.matmul %0, %1, %cst {dimension_numbers = #tpu.dot_dimension_numbers<[1], [0], [0], [1], [0, 0, 1, 1], [], []>} : vector<16x64xbf16>, vector<64x32xbf16>, vector<16x32xf32> -> vector<16x32xf32>
    %c0_3 = arith.constant 0 : index
    %c0_4 = arith.constant 0 : index
    %3 = vector.load %arg4[%c0_3, %c0_4] : memref<1x32xf32, #tpu.memory_space<vmem>>, vector<1x32xf32>
    %4 = vector.broadcast %3 : vector<1x32xf32> to vector<16x32xf32>
    %5 = arith.addf %2, %4 : vector<16x32xf32>
    %6 = arith.truncf %5 : vector<16x32xf32> to vector<16x32xbf16>
    %c0_5 = arith.constant 0 : index
    %c0_6 = arith.constant 0 : index
    %7 = vector.load %arg5[%c0_5, %c0_6] : memref<16x32xbf16, #tpu.memory_space<vmem>>, vector<16x32xbf16>
    tpu.vector_store %arg5[%c0_5, %c0_6], %6 {strides = array<i32>} : memref<16x32xbf16, #tpu.memory_space<vmem>>, vector<16x32xbf16>,
    return
  }
  func.func @transform_0(%arg0: i32, %arg1: i32) -> (i32, i32) {
    %c0_i32 = arith.constant 0 : i32
    %c0_i32_0 = arith.constant 0 : i32
    return %arg0, %c0_i32 : i32, i32
  }
  func.func @transform_1(%arg0: i32, %arg1: i32) -> (i32, i32) {
    %c0_i32 = arith.constant 0 : i32
    %c0_i32_0 = arith.constant 0 : i32
    return %c0_i32, %arg1 : i32, i32
  }
  func.func @transform_2(%arg0: i32, %arg1: i32) -> (i32, i32) {
    %c0_i32 = arith.constant 0 : i32
    %c0_i32_0 = arith.constant 0 : i32
    return %c0_i32, %arg1 : i32, i32
  }
  func.func @transform_3(%arg0: i32, %arg1: i32) -> (i32, i32) {
    %c0_i32 = arith.constant 0 : i32
    return %arg0, %arg1 : i32, i32
  }
}

module attributes {stable_mosaic.version = 11 : i64} {
  func.func @head_kernel(%arg0: i32, %arg1: memref<2x32xbf16, #tpu.memory_space<vmem>>, %arg2: memref<32x32xbf16, #tpu.memory_space<vmem>>, %arg3: memref<1x32xf32, #tpu.memory_space<vmem>>, %arg4: memref<32x4xbf16, #tpu.memory_space<vmem>>, %arg5: memref<1x4xf32, #tpu.memory_space<vmem>>, %arg6: memref<2x4xf32, #tpu.memory_space<vmem>>) attributes {dimension_semantics = [#tpu.dimension_semantics<arbitrary>], iteration_bounds = array<i64: 1>, scalar_prefetch = 0 : i64, scratch_operands = 0 : i64, tpu.core_type = #tpu.core_type<tc>, window_params = [{pipeline_mode = #tpu.pipeline_mode<synchronous>, transform_indices = @transform_0, window_bounds = array<i64: 2, 32>}, {pipeline_mode = #tpu.pipeline_mode<synchronous>, transform_indices = @transform_1, window_bounds = array<i64: 32, 32>}, {pipeline_mode = #tpu.pipeline_mode<synchronous>, transform_indices = @transform_2, window_bounds = array<i64: 1, 32>}, {pipeline_mode = #tpu.pipeline_mode<synchronous>, transform_indices = @transform_3, window_bounds = array<i64: 32, 4>}, {pipeline_mode = #tpu.pipeline_mode<synchronous>, transform_indices = @transform_4, window_bounds = array<i64: 1, 4>}, {pipeline_mode = #tpu.pipeline_mode<synchronous>, transform_indices = @transform_5, window_bounds = array<i64: 2, 4>}]} {
    %c0 = arith.constant 0 : index
    %c0_0 = arith.constant 0 : index
    %0 = vector.load %arg1[%c0, %c0_0] : memref<2x32xbf16, #tpu.memory_space<vmem>>, vector<2x32xbf16>
    %c0_1 = arith.constant 0 : index
    %c0_2 = arith.constant 0 : index
    %1 = vector.load %arg2[%c0_1, %c0_2] : memref<32x32xbf16, #tpu.memory_space<vmem>>, vector<32x32xbf16>
    %cst = arith.constant dense<0.000000e+00> : vector<2x32xf32>
    %2 = tpu.matmul %0, %1, %cst {dimension_numbers = #tpu.dot_dimension_numbers<[1], [0], [0], [1], [0, 0, 1, 1], [], []>} : vector<2x32xbf16>, vector<32x32xbf16>, vector<2x32xf32> -> vector<2x32xf32>
    %c0_3 = arith.constant 0 : index
    %c0_4 = arith.constant 0 : index
    %3 = vector.load %arg3[%c0_3, %c0_4] : memref<1x32xf32, #tpu.memory_space<vmem>>, vector<1x32xf32>
    %4 = vector.broadcast %3 : vector<1x32xf32> to vector<2x32xf32>
    %5 = arith.addf %2, %4 : vector<2x32xf32>
    %6 = math.tanh %5 : vector<2x32xf32>
    %7 = arith.truncf %6 : vector<2x32xf32> to vector<2x32xbf16>
    %c0_5 = arith.constant 0 : index
    %c0_6 = arith.constant 0 : index
    %8 = vector.load %arg4[%c0_5, %c0_6] : memref<32x4xbf16, #tpu.memory_space<vmem>>, vector<32x4xbf16>
    %cst_7 = arith.constant dense<0.000000e+00> : vector<2x4xf32>
    %9 = tpu.matmul %7, %8, %cst_7 {dimension_numbers = #tpu.dot_dimension_numbers<[1], [0], [0], [1], [0, 0, 1, 1], [], []>} : vector<2x32xbf16>, vector<32x4xbf16>, vector<2x4xf32> -> vector<2x4xf32>
    %c0_8 = arith.constant 0 : index
    %c0_9 = arith.constant 0 : index
    %10 = vector.load %arg5[%c0_8, %c0_9] : memref<1x4xf32, #tpu.memory_space<vmem>>, vector<1x4xf32>
    %11 = vector.broadcast %10 : vector<1x4xf32> to vector<2x4xf32>
    %12 = arith.addf %9, %11 : vector<2x4xf32>
    %c0_10 = arith.constant 0 : index
    %c0_11 = arith.constant 0 : index
    %13 = vector.load %arg6[%c0_10, %c0_11] : memref<2x4xf32, #tpu.memory_space<vmem>>, vector<2x4xf32>
    tpu.vector_store %arg6[%c0_10, %c0_11], %12 {strides = array<i32>} : memref<2x4xf32, #tpu.memory_space<vmem>>, vector<2x4xf32>,
    return
  }
  func.func @transform_0(%arg0: i32) -> (i32, i32) {
    %c0_i32 = arith.constant 0 : i32
    %c0_i32_0 = arith.constant 0 : i32
    %c0_i32_1 = arith.constant 0 : i32
    return %c0_i32, %c0_i32_0 : i32, i32
  }
  func.func @transform_1(%arg0: i32) -> (i32, i32) {
    %c0_i32 = arith.constant 0 : i32
    %c0_i32_0 = arith.constant 0 : i32
    %c0_i32_1 = arith.constant 0 : i32
    return %c0_i32, %c0_i32_0 : i32, i32
  }
  func.func @transform_2(%arg0: i32) -> (i32, i32) {
    %c0_i32 = arith.constant 0 : i32
    %c0_i32_0 = arith.constant 0 : i32
    %c0_i32_1 = arith.constant 0 : i32
    return %c0_i32, %c0_i32_0 : i32, i32
  }
  func.func @transform_3(%arg0: i32) -> (i32, i32) {
    %c0_i32 = arith.constant 0 : i32
    %c0_i32_0 = arith.constant 0 : i32
    %c0_i32_1 = arith.constant 0 : i32
    return %c0_i32, %c0_i32_0 : i32, i32
  }
  func.func @transform_4(%arg0: i32) -> (i32, i32) {
    %c0_i32 = arith.constant 0 : i32
    %c0_i32_0 = arith.constant 0 : i32
    %c0_i32_1 = arith.constant 0 : i32
    return %c0_i32, %c0_i32_0 : i32, i32
  }
  func.func @transform_5(%arg0: i32) -> (i32, i32) {
    %c0_i32 = arith.constant 0 : i32
    %c0_i32_0 = arith.constant 0 : i32
    %c0_i32_1 = arith.constant 0 : i32
    return %c0_i32, %c0_i32_0 : i32, i32
  }
}

</mosaic_0001>

<bundles_post_ra>
// kernel: kobert_classifier_forward.10
= control target key start
LH: loop header
LB: loop body
LE: loop exit
PB: predicated region body
PF: predicated region fallthrough
CT: control target
= control target key end

     0   :  { %v130_v0 = vmov 0.0   ;;  %vm131_vm0 = vmmov 0   ;;  %vm45_vm1 = vcmask 261120   ;;  %vm98_vm2 = vcmask 781312   ;;  %s170_s1 = inlined_call_operand.vmem [shape: bf16[32,96], index: 1, kind: input, shape index: {}]   ;;  %s171_s0 = inlined_call_operand.vmem [shape: bf16[16,32], index: 0, kind: input, shape index: {}]   ;;  %s172_s2 = inlined_call_operand.vmem [shape: f32[1,96], index: 2, kind: input, shape index: {}]   ;;  %s173_s3 = inlined_call_operand.vmem [shape: bf16[16,96], index: 3, kind: output, shape index: {}]  }
   0x1   :  { %117 = vmatprep.subr.bf16.mxu0 %v130_v0  ;;  %v127_v1 = vld [vmem:[%s170_s1 + $0x8] sm:$0xff]   ;;  %121 = vmatprep.mubr.msk.bf16.mxu0 %vm131_vm0, %v130_v0  ;;  %v128_v2 = vld [vmem:[%s170_s1] sm:$0xff]  }
   0x2   :  { %118 = vmatpush3.bf16.msra.mxu0 %v127_v1  ;;  %v129_v3 = vld [vmem:[%s171_s0] sm:$0xff]  }
   0x3   :  { %119 = vmatprep.subr.bf16.mxu0 %v130_v0  ;;  %v105_v4 = vld [vmem:[%s172_s2] ss:$0 sm:$0xff] }
   0x6   :  { %120 = vmatpush3.bf16.msra.mxu0 %v128_v2 }
   0x9   :  { %122 = vmatmul.mubr.msk.bf16.vlgmr.msra.gmra.mxu0 %vm45_vm1, %v129_v3 }
  0xc9   :  { %v83_v5 = vpop.f32.mrf.mxu0 }
  0xca   :  { %v84_v6 = vadd.f32 %v105_v4, %v83_v5 }
  0xcb   :  { %v123_v7 = vpop.f32.mrf.mxu0 }
  0xcc   :  { %v112_v8 = vpack.c.bf16 %v84_v6, %v84_v6 }
  0xcd   :  { %v86_v9 = vpop.f32.mrf.mxu0 }
  0xce   :  { %99 = vst.msk [vmem:[%s173_s3] sm:$0xf] %vm98_vm2, %v112_v8  ;;  %v87_v10 = vadd.f32 %v105_v4, %v86_v9 }
  0xcf   :  { %v124_v11 = vpop.f32.mrf.mxu0 }
  0xd0   :  { %v113_v12 = vpack.c.bf16 %v87_v10, %v87_v10 }
  0xd2   :  { %100 = vst.msk [vmem:[%s173_s3 + $0x4] sm:$0xf] %vm98_vm2, %v113_v12 }

// kernel: kobert_classifier_forward.9
= control target key start
LH: loop header
LB: loop body
LE: loop exit
PB: predicated region body
PF: predicated region fallthrough
CT: control target
= control target key end

     0   :  { %vm18_vm0 = vcmask 261120   ;;  %vm70_vm1 = vcmask 257024   ;;  %s129_s0 = inlined_call_operand.vmem [shape: f32[16,32], index: 0, kind: input, shape index: {}]   ;;  %s130_s1 = inlined_call_operand.vmem [shape: f32[1,32], index: 1, kind: input, shape index: {}]   ;;  %s131_s2 = inlined_call_operand.vmem [shape: f32[1,32], index: 2, kind: input, shape index: {}]   ;;  %s132_s3 = inlined_call_operand.vmem [shape: bf16[16,32], index: 3, kind: output, shape index: {}]  }
   0x1   :  { %v14_v0 = vld [vmem:[%s129_s0] sm:$0xff]  ;;  %v15_v1 = vld [vmem:[%s129_s0 + $0x8] sm:$0xff] }
   0x2   :  { %v19_v2 = vsel %vm18_vm0, %v14_v0, 0.0  ;;  %v22_v3 = vsel %vm18_vm0, %v15_v1, 0.0  ;;  %v77_v21 = vld [vmem:[%s130_s1] ss:$0 sm:$0xff] }
   0x3   :  { %20 = vadd.xlane.f32.xlu0 %v19_v2  ;;  %v78_v23 = vld [vmem:[%s131_s2] ss:$0 sm:$0xff] }
   0x7   :  { %23 = vadd.xlane.f32.xlu0 %v22_v3 }
  0x8c   :  { %v21_v4 = vpop.xlane.xlu0 %20 }
  0x8d   :  { %v26_v5 = vmul.f32 0.03125, %v21_v4 }
  0x8f   :  { %v28_v6 = vsub.f32 %v14_v0, %v26_v5 }
  0x90   :  { %v24_v7 = vpop.xlane.xlu0 %23 }
  0x91   :  { %v27_v8 = vmul.f32 0.03125, %v24_v7  ;;  %v30_v9 = vmul.f32 %v28_v6, %v28_v6 }
  0x93   :  { %v29_v10 = vsub.f32 %v15_v1, %v27_v8  ;;  %v32_v11 = vsel %vm18_vm0, %v30_v9, 0.0 }
  0x94   :  { %33 = vadd.xlane.f32.xlu1 %v32_v11 }
  0x95   :  { %v31_v12 = vmul.f32 %v29_v10, %v29_v10 }
  0x97   :  { %v35_v13 = vsel %vm18_vm0, %v31_v12, 0.0 }
  0x98   :  { %36 = vadd.xlane.f32.xlu1 %v35_v13 }
 0x11d   :  { %v34_v14 = vpop.xlane.xlu1 %33 }
 0x11e   :  { %v38_v15 = vmul.f32 0.03125, %v34_v14 }
 0x120   :  { %v40_v16 = vadd.f32 1e-12, %v38_v15 }
 0x121   :  { %v37_v17 = vpop.xlane.xlu1 %36 }
 0x122   :  { %83 = vrsqrt.f32 %v40_v16  ;;  %v39_v18 = vmul.f32 0.03125, %v37_v17 }
 0x124   :  { %v41_v19 = vadd.f32 1e-12, %v39_v18 }
 0x126   :  { %85 = vrsqrt.f32 %v41_v19 }
 0x12f   :  { %v84_v20 = vpop.eup %83 }
 0x130   :  { %v44_v22 = vmul.f32 %v84_v20, %v28_v6 }
 0x132   :  { %v52_v24 = vmul.f32 %v77_v21, %v44_v22 }
 0x133   :  { %v86_v25 = vpop.eup %85 }
 0x134   :  { %v60_v26 = vadd.f32 %v78_v23, %v52_v24  ;;  %v45_v27 = vmul.f32 %v86_v25, %v29_v10 }
 0x136   :  { %v81_v28 = vpack.c.bf16 %v60_v26, %v60_v26  ;;  %v53_v29 = vmul.f32 %v77_v21, %v45_v27 }
 0x138   :  { %71 = vst.msk [vmem:[%s132_s3] sm:$0xf] %vm70_vm1, %v81_v28  ;;  %v61_v30 = vadd.f32 %v78_v23, %v53_v29 }
 0x13a   :  { %v82_v31 = vpack.c.bf16 %v61_v30, %v61_v30 }
 0x13c   :  { %72 = vst.msk [vmem:[%s132_s3 + $0x4] sm:$0xf] %vm70_vm1, %v82_v31 }

// kernel: kobert_classifier_forward.12
= control target key start
LH: loop header
LB: loop body
LE: loop exit
PB: predicated region body
PF: predicated region fallthrough
CT: control target
= control target key end

     0   :  { %v130_v0 = vmov 0.0   ;;  %vm131_vm0 = vmmov 0   ;;  %vm45_vm1 = vcmask 261120   ;;  %vm98_vm2 = vcmask 257024   ;;  %s170_s1 = inlined_call_operand.vmem [shape: bf16[32,32], index: 1, kind: input, shape index: {}]   ;;  %s171_s0 = inlined_call_operand.vmem [shape: bf16[16,32], index: 0, kind: input, shape index: {}]   ;;  %s172_s2 = inlined_call_operand.vmem [shape: f32[1,32], index: 2, kind: input, shape index: {}]   ;;  %s173_s3 = inlined_call_operand.vmem [shape: bf16[16,32], index: 3, kind: output, shape index: {}]  }
   0x1   :  { %117 = vmatprep.subr.bf16.mxu0 %v130_v0  ;;  %v127_v1 = vld [vmem:[%s170_s1 + $0x8] sm:$0xff]   ;;  %121 = vmatprep.mubr.msk.bf16.mxu0 %vm131_vm0, %v130_v0  ;;  %v128_v2 = vld [vmem:[%s170_s1] sm:$0xff]  }
   0x2   :  { %118 = vmatpush3.bf16.msra.mxu0 %v127_v1  ;;  %v129_v3 = vld [vmem:[%s171_s0] sm:$0xff]  }
   0x3   :  { %119 = vmatprep.subr.bf16.mxu0 %v130_v0  ;;  %v105_v4 = vld [vmem:[%s172_s2] ss:$0 sm:$0xff] }
   0x6   :  { %120 = vmatpush3.bf16.msra.mxu0 %v128_v2 }
   0x9   :  { %122 = vmatmul.mubr.msk.bf16.vlgmr.msra.gmra.mxu0 %vm45_vm1, %v129_v3 }
  0xc9   :  { %v83_v5 = vpop.f32.mrf.mxu0 }
  0xca   :  { %v84_v6 = vadd.f32 %v105_v4, %v83_v5 }
  0xcb   :  { %v123_v7 = vpop.f32.mrf.mxu0 }
  0xcc   :  { %v112_v8 = vpack.c.bf16 %v84_v6, %v84_v6 }
  0xcd   :  { %v86_v9 = vpop.f32.mrf.mxu0 }
  0xce   :  { %99 = vst.msk [vmem:[%s173_s3] sm:$0xf] %vm98_vm2, %v112_v8  ;;  %v87_v10 = vadd.f32 %v105_v4, %v86_v9 }
  0xcf   :  { %v124_v11 = vpop.f32.mrf.mxu0 }
  0xd0   :  { %v113_v12 = vpack.c.bf16 %v87_v10, %v87_v10 }
  0xd2   :  { %100 = vst.msk [vmem:[%s173_s3 + $0x4] sm:$0xf] %vm98_vm2, %v113_v12 }

// kernel: kobert_classifier_forward.11
= control target key start
LH: loop header
LB: loop body
LE: loop exit
PB: predicated region body
PF: predicated region fallthrough
CT: control target
= control target key end

     0   :  { %s901_s9 = smov 0   ;;  %s1007_s0 = inlined_call_operand.vmem [shape: bf16[2,8,96], index: 0, kind: input, shape index: {}]   ;;  %s1008_s1 = inlined_call_operand.vmem [shape: f32[2,1,8], index: 1, kind: input, shape index: {}]   ;;  %s1009_s2 = inlined_call_operand.vmem [shape: bf16[2,8,32], index: 2, kind: output, shape index: {}]  }
   0x1 LB: > { %s723_s10 = sadd.s32 4294967295, %s868_s9   ;;  %p727_p0 = scmp.ge.s32.totalorder %s868_s9, 1  ;;  %s868_s9 = sphi %s901_s9, %s12_s9  }
   0x2   : > { %p119_p1 = scmp.lt.s32.totalorder %s868_s9, 3 }
   0x4   : > { %p120_p2 = pnand %p727_p0, %p119_p1 }
   0x5   : > { %p142_p3 = scmp.lt.s32.totalorder (!%p120_p2), %s723_s10, 1  ;;  %s872_s15 = smov (!%p120_p2), 96  }
   0x6   : > { %123 = sbr.rel (%p120_p2) target bundleno = 1538 (0x602), region = 28  ;;  %s873_s16 = smov (!%p120_p2), 64  }
   0x7   : > { %s874_s17 = smov (!%p120_p2), 88   ;;  %s875_s21 = smov (!%p120_p2), 72  }
   0x8   : > { %s876_s22 = smov (!%p120_p2), 120   ;;  %s877_s23 = smov (!%p120_p2), 80  }
   0x9   : > { %s878_s24 = smov (!%p120_p2), 112   ;;  %s879_s25 = smov (!%p120_p2), 104  }
   0xa   : > { %s880_s29 = smov (!%p120_p2), 56   ;;  %s881_s30 = smov (!%p120_p2), 48  }
   0xb   : > { %v870_v0 = vmov 0.0   ;;  %vm871_vm0 = vmmov 0   ;;  %s1011_s10 = smov (!%p142_p3, %s723_s10), 1  ;;  %vm169_vm1 = vcmask 64512   ;;  %vm233_vm2 = vcmask 1043456   ;;  %s882_s3 = smov 40  }
   0xc   : > { %770 = vmatprep.subr.bf16.mxu0 %v870_v0  ;;  %772 = vmatprep.mubr.msk.bf16.mxu0 %vm871_vm0, %v870_v0  ;;  %s728_s11 = sshll.u32 %s1011_s10, 2  ;;  %s148_s20 = scalar_lea.vmem %s1008_s1, %s1011_s10  ;;  %vm278_vm3 = vcmask 60416   ;;  %vm405_vm4 = vcmask 126016   ;;  %vm532_vm5 = vcmask 191616   ;;  %vm659_vm6 = vcmask 257216  }
   0xd   : > { %776 = vmatprep.subr.bf16.mxu1 %v870_v0  ;;  %778 = vmatprep.mubr.msk.bf16.mxu1 %vm871_vm0, %v870_v0  ;;  %s923_s14 = scalar_lea.vmem %s1007_s0, %s728_s11  ;;  %v939_v8 = vld [vmem:[%s148_s20] ss:$0 sm:$0xff]  ;;  %s974_s28 = scalar_lea.vmem %s1009_s2, %s728_s11 }
   0xe   : > { %v156_v1 = vld [vmem:[%s923_s14] sm:$0xf]  ;;  %s883_s4 = smov 8   ;;  %s884_s5 = smov 16  }
   0xf   : > { %v731_v2 = vcombine.low %v156_v1, %v156_v1  ;;  %v157_v5 = vmul.bf16 1052065461, %v156_v1  ;;  %v280_v6 = vld [vmem:[%s923_s14] sm:$0xf]  ;;  %s885_s6 = smov 24  }
  0x10   : > { %v932_v7 = vcombine.low %v280_v6, %v280_v6  ;;  %v534_v15 = vld [vmem:[%s923_s14] sm:$0xf]  ;;  %v281_v24 = vmul.bf16 1052065461, %v280_v6 }
  0x11   : > { %167 = vrot.lane.b32.xlu0 %v731_v2, %s872_s15  ;;  %228 = vrot.lane.b32.xlu1 %v731_v2, %s873_s16  ;;  %v944_v16 = vcombine.low %v534_v15, %v534_v15  ;;  %v407_v26 = vld [vmem:[%s923_s14] sm:$0xf]  ;;  %v535_v30 = vmul.bf16 1052065461, %v534_v15 }
  0x12   : > { %v734_v25 = vcombine.low %v281_v24, %v281_v24  ;;  %v951_v27 = vcombine.low %v407_v26, %v407_v26  ;;  %v408_v28 = vmul.bf16 1052065461, %v407_v26 }
  0x13   : > { %v744_v31 = vcombine.low %v535_v30, %v535_v30 }
  0x14   : > { %v739_v29 = vcombine.low %v408_v28, %v408_v28 }
  0x15   : > { %290 = vrot.lane.b32.xlu1 %v932_v7, %s874_s17 }
  0x83   : > { %v168_v3 = vpop.permute.xlu0 %167  ;;  %v229_v17 = vpop.permute.xlu1 %228 }
  0x84   : > { %v174_v4 = vsel %vm169_vm1, %v168_v3, 0  ;;  %v235_v18 = vsel %vm233_vm2, %v229_v17, 0 }
  0x85   : > { %771 = vmatpush3.bf16.xpose.msra.mxu0 %v174_v4  ;;  %777 = vmatpush3.bf16.msra.mxu1 %v235_v18 }
  0x86   : > { %788 = vmatprep.subr.bf16.mxu0 %v870_v0  ;;  %782 = vmatprep.subr.bf16.mxu1 %v870_v0 }
  0x87   : > { %v291_v32 = vpop.permute.xlu1 %290 }
  0x88   : > { %v296_v38 = vsel %vm169_vm1, %v291_v32, 0 }
  0x8c   : > { %773 = vmatmul.mubr.msk.bf16.vlgmr.msra.gmra.mxu0 %vm169_vm1, %v157_v5 }
  0x8d   : > { %790 = vmatprep.mubr.msk.bf16.mxu0 %vm871_vm0, %v870_v0 }
 0x14c   : > { %v210_v9 = vpop.f32.mrf.mxu0 }
 0x14d   : > { %v211_v10 = vadd.f32 %v939_v8, %v210_v9 }
 0x14e   : > { %v774_v11 = vpop.f32.mrf.mxu0 }
 0x14f   : > { %v216_v12 = vsel %vm169_vm1, %v211_v10, -inf }
 0x150   : > { %217 = vmax.xlane.f32.xlu0 %v216_v12  ;;  %v213_v13 = vpop.f32.mrf.mxu0 }
 0x152   : > { %v775_v14 = vpop.f32.mrf.mxu0 }
 0x166   : > { %544 = vrot.lane.b32.xlu0 %v944_v16, %s875_s21 }
 0x1d9   : > { %v218_v19 = vpop.xlane.xlu0 %217 }
 0x1da   : > { %v219_v20 = vsub.f32 %v211_v10, %v218_v19 }
 0x1dc   : > { %v220_v21 = vmul.f32 1.442695, %v219_v20 }
 0x1dd   : > { %v545_v41 = vpop.permute.xlu0 %544 }
 0x1de   : > { %846 = vpow2.f32 %v220_v21  ;;  %v550_v43 = vsel %vm169_vm1, %v545_v41, 0 }
 0x1eb   : > { %v847_v22 = vpop.eup %846 }
 0x1ec   : > { %v222_v23 = vsel %vm169_vm1, %v847_v22, 0.0 }
 0x1ed   : > { %223 = vadd.xlane.f32.xlu1 %v222_v23 }
 0x1fe   : > { %285 = vrot.lane.b32.xlu1 %v734_v25, %s876_s22 }
 0x202   : > { %417 = vrot.lane.b32.xlu1 %v951_v27, %s877_s23 }
 0x206   : > { %412 = vrot.lane.b32.xlu1 %v739_v29, %s878_s24 }
 0x20a   : > { %539 = vrot.lane.b32.xlu1 %v744_v31, %s879_s25 }
 0x276   : > { %v224_v33 = vpop.xlane.xlu1 %223 }
 0x277   : > { %848 = vrcp.f32 %v224_v33 }
 0x27a   : > { %v286_v36 = vpop.permute.xlu1 %285 }
 0x27e   : > { %v418_v39 = vpop.permute.xlu1 %417 }
 0x27f   : > { %v423_v40 = vsel %vm169_vm1, %v418_v39, 0 }
 0x282   : > { %v413_v42 = vpop.permute.xlu1 %412 }
 0x284   : > { %v849_v34 = vpop.eup %848 }
 0x285   : > { %v226_v35 = vmul.f32 %v849_v34, %v847_v22 }
 0x286   : > { %v540_v44 = vpop.permute.xlu1 %539 }
 0x287   : > { %v227_v37 = vpack.c.bf16 %v226_v35, %v226_v35 }
 0x289   : > { %779 = vmatmul.mubr.msk.bf16.vlgmr.msra.gmra.mxu1 %vm169_vm1, %v227_v37 }
 0x28a   : > { %783 = vmatpush3.bf16.xpose.msra.mxu1 %v296_v38  ;;  %784 = vmatprep.mubr.msk.bf16.mxu1 %vm871_vm0, %v870_v0 }
 0x28b   : > { %794 = vmatprep.subr.bf16.mxu1 %v870_v0 }
 0x291   : > { %785 = vmatmul.mubr.msk.bf16.vlgmr.msra.gmra.mxu1 %vm169_vm1, %v286_v36 }
 0x292   : > { %795 = vmatpush3.bf16.xpose.msra.mxu1 %v423_v40  ;;  %796 = vmatprep.mubr.msk.bf16.mxu1 %vm871_vm0, %v870_v0 }
 0x293   : > { %806 = vmatprep.subr.bf16.mxu1 %v870_v0 }
 0x299   : > { %797 = vmatmul.mubr.msk.bf16.vlgmr.msra.gmra.mxu1 %vm169_vm1, %v413_v42 }
 0x29a   : > { %807 = vmatpush3.bf16.xpose.msra.mxu1 %v550_v43  ;;  %808 = vmatprep.mubr.msk.bf16.mxu1 %vm871_vm0, %v870_v0 }
 0x2a1   : > { %809 = vmatmul.mubr.msk.bf16.vlgmr.msra.gmra.mxu1 %vm169_vm1, %v540_v44 }
 0x349   : > { %v271_v45 = vpop.f32.mrf.mxu1 }
 0x34a   : > { %v277_v46 = vpack.c.bf16 %v271_v45, %v271_v45 }
 0x34b   : > { %v780_v47 = vpop.f32.mrf.mxu1 }
 0x34c   : > { %279 = vst.msk [vmem:[%s974_s28] sm:$0xf] %vm278_vm3, %v277_v46 }
 0x34d   : > { %v274_v48 = vpop.f32.mrf.mxu1 }
 0x34f   : > { %v781_v49 = vpop.f32.mrf.mxu1 }
 0x351   : > { %v332_v50 = vpop.f32.mrf.mxu1 }
 0x352   : > { %v333_v51 = vadd.f32 %v939_v8, %v332_v50 }
 0x353   : > { %v786_v52 = vpop.f32.mrf.mxu1 }
 0x354   : > { %v338_v53 = vsel %vm169_vm1, %v333_v51, -inf }
 0x355   : > { %339 = vmax.xlane.f32.xlu1 %v338_v53  ;;  %v335_v54 = vpop.f32.mrf.mxu1 }
 0x357   : > { %v787_v55 = vpop.f32.mrf.mxu1 }
 0x359   : > { %v459_v56 = vpop.f32.mrf.mxu1 }
 0x35a   : > { %v460_v57 = vadd.f32 %v939_v8, %v459_v56 }
 0x35b   : > { %v798_v58 = vpop.f32.mrf.mxu1 }
 0x35c   : > { %v465_v59 = vsel %vm169_vm1, %v460_v57, -inf }
 0x35d   : > { %466 = vmax.xlane.f32.xlu0 %v465_v59  ;;  %v462_v60 = vpop.f32.mrf.mxu1 }
 0x35f   : > { %v799_v61 = vpop.f32.mrf.mxu1 }
 0x361   : > { %v586_v62 = vpop.f32.mrf.mxu1 }
 0x362   : > { %v587_v63 = vadd.f32 %v939_v8, %v586_v62 }
 0x363   : > { %v810_v1 = vpop.f32.mrf.mxu1 }
 0x364   : > { %v592_v2 = vsel %vm169_vm1, %v587_v63, -inf }
 0x365   : > { %593 = vmax.xlane.f32.xlu1 %v592_v2  ;;  %v589_v3 = vpop.f32.mrf.mxu1 }
 0x367   : > { %v811_v4 = vpop.f32.mrf.mxu1 }
 0x3de   : > { %v340_v5 = vpop.xlane.xlu1 %339 }
 0x3df   : > { %v341_v6 = vsub.f32 %v333_v51, %v340_v5 }
 0x3e1   : > { %v342_v9 = vmul.f32 1.442695, %v341_v6 }
 0x3e3   : > { %850 = vpow2.f32 %v342_v9 }
 0x3e6   : > { %v467_v17 = vpop.xlane.xlu0 %466 }
 0x3e7   : > { %v468_v18 = vsub.f32 %v460_v57, %v467_v17 }
 0x3e9   : > { %v469_v19 = vmul.f32 1.442695, %v468_v18 }
 0x3ee   : > { %v594_v10 = vpop.xlane.xlu1 %593 }
 0x3ef   : > { %v595_v11 = vsub.f32 %v587_v63, %v594_v10 }
 0x3f0   : > { %v851_v12 = vpop.eup %850 }
 0x3f1   : > { %v596_v13 = vmul.f32 1.442695, %v595_v11  ;;  %v344_v14 = vsel %vm169_vm1, %v851_v12, 0.0 }
 0x3f2   : > { %345 = vadd.xlane.f32.xlu1 %v344_v14 }
 0x3f3   : > { %852 = vpow2.f32 %v596_v13 }
 0x3f4   : > { %854 = vpow2.f32 %v469_v19 }
 0x400   : > { %v853_v15 = vpop.eup %852 }
 0x401   : > { %v598_v8 = vsel %vm169_vm1, %v853_v15, 0.0  ;;  %v855_v20 = vpop.eup %854 }
 0x402   : > { %599 = vadd.xlane.f32.xlu0 %v598_v8  ;;  %v471_v21 = vsel %vm169_vm1, %v855_v20, 0.0 }
 0x403   : > { %350 = vrot.lane.b32.xlu1 %v932_v7, %s880_s29 }
 0x418   : > { %477 = vrot.lane.b32.xlu0 %v951_v27, %s881_s30 }
 0x427   : > { %472 = vadd.xlane.f32.xlu1 %v471_v21 }
 0x438   : > { %604 = vrot.lane.b32.xlu1 %v944_v16, %s882_s3 }
 0x47b   : > { %v346_v22 = vpop.xlane.xlu1 %345 }
 0x47c   : > { %856 = vrcp.f32 %v346_v22 }
 0x47f   : > { %v351_v23 = vpop.permute.xlu1 %350 }
 0x480   : > { %v356_v24 = vsel %vm233_vm2, %v351_v23, 0 }
 0x481   : > { %789 = vmatpush3.bf16.msra.mxu0 %v356_v24 }
 0x482   : > { %800 = vmatprep.subr.bf16.mxu0 %v870_v0 }
 0x489   : > { %v857_v7 = vpop.eup %856 }
 0x48a   : > { %v348_v25 = vmul.f32 %v857_v7, %v851_v12 }
 0x48b   : > { %v600_v26 = vpop.xlane.xlu0 %599 }
 0x48c   : > { %v349_v28 = vpack.c.bf16 %v348_v25, %v348_v25 }
 0x48e   : > { %791 = vmatmul.mubr.msk.bf16.vlgmr.msra.gmra.mxu0 %vm169_vm1, %v349_v28 }
 0x48f   : > { %v478_v27 = vpop.permute.xlu0 %477  ;;  %802 = vmatprep.mubr.msk.bf16.mxu0 %vm871_vm0, %v870_v0 }
 0x490   : > { %v483_v16 = vsel %vm233_vm2, %v478_v27, 0 }
 0x491   : > { %801 = vmatpush3.bf16.msra.mxu0 %v483_v16 }
 0x492   : > { %812 = vmatprep.subr.bf16.mxu0 %v870_v0 }
 0x4b0   : > { %v473_v29 = vpop.xlane.xlu1 %472 }
 0x4b1   : > { %858 = vrcp.f32 %v473_v29 }
 0x4b2   : > { %860 = vrcp.f32 %v600_v26 }
 0x4b4   : > { %v605_v31 = vpop.permute.xlu1 %604 }
 0x4b5   : > { %v610_v33 = vsel %vm233_vm2, %v605_v31, 0 }
 0x4be   : > { %v859_v30 = vpop.eup %858 }
 0x4bf   : > { %v475_v32 = vmul.f32 %v859_v30, %v855_v20  ;;  %v861_v35 = vpop.eup %860 }
 0x4c0   : > { %v602_v36 = vmul.f32 %v861_v35, %v853_v15 }
 0x4c1   : > { %v476_v34 = vpack.c.bf16 %v475_v32, %v475_v32 }
 0x4c2   : > { %v603_v37 = vpack.c.bf16 %v602_v36, %v602_v36 }
 0x4c3   : > { %803 = vmatmul.mubr.msk.bf16.vlgmr.msra.gmra.mxu0 %vm169_vm1, %v476_v34 }
 0x4c4   : > { %813 = vmatpush3.bf16.msra.mxu0 %v610_v33  ;;  %814 = vmatprep.mubr.msk.bf16.mxu0 %vm871_vm0, %v870_v0 }
 0x4cb   : > { %815 = vmatmul.mubr.msk.bf16.vlgmr.msra.gmra.mxu0 %vm169_vm1, %v603_v37 }
 0x54e   : > { %v392_v38 = vpop.f32.mrf.mxu0 }
 0x54f   : > { %v751_v39 = vpack.c.bf16 %v392_v38, %v392_v38 }
 0x550   : > { %v792_v40 = vpop.f32.mrf.mxu0 }
 0x551   : > { %402 = vrot.lane.b32.xlu1 %v751_v39, %s883_s4 }
 0x552   : > { %v395_v41 = vpop.f32.mrf.mxu0 }
 0x554   : > { %v793_v42 = vpop.f32.mrf.mxu0 }
 0x583   : > { %v519_v43 = vpop.f32.mrf.mxu0 }
 0x584   : > { %v752_v44 = vpack.c.bf16 %v519_v43, %v519_v43 }
 0x585   : > { %v804_v45 = vpop.f32.mrf.mxu0 }
 0x586   : > { %529 = vrot.lane.b32.xlu0 %v752_v44, %s884_s5 }
 0x587   : > { %v522_v46 = vpop.f32.mrf.mxu0 }
 0x589   : > { %v805_v0 = vpop.f32.mrf.mxu0 }
 0x58b   : > { %v646_v47 = vpop.f32.mrf.mxu0 }
 0x58c   : > { %v753_v48 = vpack.c.bf16 %v646_v47, %v646_v47 }
 0x58d   : > { %v816_v49 = vpop.f32.mrf.mxu0 }
 0x58e   : > { %656 = vrot.lane.b32.xlu1 %v753_v48, %s885_s6 }
 0x58f   : > { %v649_v50 = vpop.f32.mrf.mxu0 }
 0x591   : > { %v817_v51 = vpop.f32.mrf.mxu0 }
 0x5c3   : > { %v403_v52 = vpop.permute.xlu1 %402 }
 0x5c4   : > { %406 = vst.msk [vmem:[%s974_s28] sm:$0xf] %vm405_vm4, %v403_v52 }
 0x5f8   : > { %v530_v53 = vpop.permute.xlu0 %529 }
 0x5f9   : > { %533 = vst.msk [vmem:[%s974_s28] sm:$0xf] %vm532_vm5, %v530_v53 }
 0x600   : > { %v657_v54 = vpop.permute.xlu1 %656 }
 0x601   : > { %660 = vst.msk [vmem:[%s974_s28] sm:$0xf] %vm659_vm6, %v657_v54 }
 0x602 PF: > { %s12_s9 = sadd.s32 1, %s868_s9  }
 0x603   : > { %p9_p4 = scmp.ge.s32.totalorder %s12_s9, 4  }
 0x605   :  { %11 = sbr.rel (!%p9_p4) target bundleno = 1 (0x1), region = 61 }

// kernel: kobert_classifier_forward.13
= control target key start
LH: loop header
LB: loop body
LE: loop exit
PB: predicated region body
PF: predicated region fallthrough
CT: control target
= control target key end

     0   :  { %vm29_vm0 = vcmask 261120   ;;  %vm81_vm1 = vcmask 257024   ;;  %s153_s0 = inlined_call_operand.vmem [shape: bf16[16,32], index: 0, kind: input, shape index: {}]   ;;  %s154_s1 = inlined_call_operand.vmem [shape: bf16[16,32], index: 1, kind: input, shape index: {}]   ;;  %s155_s2 = inlined_call_operand.vmem [shape: f32[1,32], index: 2, kind: input, shape index: {}]   ;;  %s156_s3 = inlined_call_operand.vmem [shape: f32[1,32], index: 3, kind: input, shape index: {}]   ;;  %s157_s4 = inlined_call_operand.vmem [shape: bf16[16,32], index: 4, kind: output, shape index: {}]  }
   0x1   :  { %v95_v0 = vld [vmem:[%s153_s0] sm:$0xff]  }
   0x2   :  { %v99_v1 = vld [vmem:[%s154_s1] sm:$0xff]   ;;  %v96_v2 = vunpack.c.l.bf16 %v95_v0  ;;  %v97_v4 = vunpack.c.h.bf16 %v95_v0 }
   0x3   :  { %v100_v3 = vunpack.c.l.bf16 %v99_v1  ;;  %v101_v5 = vunpack.c.h.bf16 %v99_v1  ;;  %v88_v27 = vld [vmem:[%s155_s2] ss:$0 sm:$0xff] }
   0x4   :  { %v89_v29 = vld [vmem:[%s156_s3] ss:$0 sm:$0xff] }
   0x5   :  { %v25_v6 = vadd.f32 %v100_v3, %v96_v2  ;;  %v26_v7 = vadd.f32 %v101_v5, %v97_v4 }
   0x7   :  { %v30_v8 = vsel %vm29_vm0, %v25_v6, 0.0  ;;  %v33_v9 = vsel %vm29_vm0, %v26_v7, 0.0 }
   0x8   :  { %31 = vadd.xlane.f32.xlu0 %v30_v8 }
   0xc   :  { %34 = vadd.xlane.f32.xlu0 %v33_v9 }
  0x91   :  { %v32_v10 = vpop.xlane.xlu0 %31 }
  0x92   :  { %v37_v11 = vmul.f32 0.03125, %v32_v10 }
  0x94   :  { %v39_v12 = vsub.f32 %v25_v6, %v37_v11 }
  0x95   :  { %v35_v13 = vpop.xlane.xlu0 %34 }
  0x96   :  { %v38_v14 = vmul.f32 0.03125, %v35_v13  ;;  %v41_v15 = vmul.f32 %v39_v12, %v39_v12 }
  0x98   :  { %v40_v16 = vsub.f32 %v26_v7, %v38_v14  ;;  %v43_v17 = vsel %vm29_vm0, %v41_v15, 0.0 }
  0x99   :  { %44 = vadd.xlane.f32.xlu1 %v43_v17 }
  0x9a   :  { %v42_v18 = vmul.f32 %v40_v16, %v40_v16 }
  0x9c   :  { %v46_v19 = vsel %vm29_vm0, %v42_v18, 0.0 }
  0x9d   :  { %47 = vadd.xlane.f32.xlu1 %v46_v19 }
 0x122   :  { %v45_v20 = vpop.xlane.xlu1 %44 }
 0x123   :  { %v49_v21 = vmul.f32 0.03125, %v45_v20 }
 0x125   :  { %v51_v22 = vadd.f32 1e-12, %v49_v21 }
 0x126   :  { %v48_v23 = vpop.xlane.xlu1 %47 }
 0x127   :  { %102 = vrsqrt.f32 %v51_v22  ;;  %v50_v24 = vmul.f32 0.03125, %v48_v23 }
 0x129   :  { %v52_v25 = vadd.f32 1e-12, %v50_v24 }
 0x12b   :  { %104 = vrsqrt.f32 %v52_v25 }
 0x134   :  { %v103_v26 = vpop.eup %102 }
 0x135   :  { %v55_v28 = vmul.f32 %v103_v26, %v39_v12 }
 0x137   :  { %v63_v30 = vmul.f32 %v88_v27, %v55_v28 }
 0x138   :  { %v105_v31 = vpop.eup %104 }
 0x139   :  { %v71_v32 = vadd.f32 %v89_v29, %v63_v30  ;;  %v56_v33 = vmul.f32 %v105_v31, %v40_v16 }
 0x13b   :  { %v92_v34 = vpack.c.bf16 %v71_v32, %v71_v32  ;;  %v64_v35 = vmul.f32 %v88_v27, %v56_v33 }
 0x13d   :  { %82 = vst.msk [vmem:[%s157_s4] sm:$0xf] %vm81_vm1, %v92_v34  ;;  %v72_v36 = vadd.f32 %v89_v29, %v64_v35 }
 0x13f   :  { %v93_v37 = vpack.c.bf16 %v72_v36, %v72_v36 }
 0x141   :  { %83 = vst.msk [vmem:[%s157_s4 + $0x4] sm:$0xf] %vm81_vm1, %v93_v37 }

// kernel: kobert_classifier_forward.14
= control target key start
LH: loop header
LB: loop body
LE: loop exit
PB: predicated region body
PF: predicated region fallthrough
CT: control target
= control target key end

     0   :  { %v152_v0 = vmov 0.0   ;;  %vm153_vm0 = vmmov 0   ;;  %vm45_vm1 = vcmask 261120   ;;  %vm116_vm2 = vcmask 519168   ;;  %s192_s1 = inlined_call_operand.vmem [shape: bf16[32,64], index: 1, kind: input, shape index: {}]   ;;  %s193_s0 = inlined_call_operand.vmem [shape: bf16[16,32], index: 0, kind: input, shape index: {}]   ;;  %s194_s2 = inlined_call_operand.vmem [shape: f32[1,64], index: 2, kind: input, shape index: {}]   ;;  %s195_s3 = inlined_call_operand.vmem [shape: bf16[16,64], index: 3, kind: output, shape index: {}]  }
   0x1   :  { %135 = vmatprep.subr.bf16.mxu0 %v152_v0  ;;  %v145_v1 = vld [vmem:[%s192_s1 + $0x8] sm:$0xff]   ;;  %139 = vmatprep.mubr.msk.bf16.mxu0 %vm153_vm0, %v152_v0  ;;  %v146_v2 = vld [vmem:[%s192_s1] sm:$0xff]  }
   0x2   :  { %136 = vmatpush3.bf16.msra.mxu0 %v145_v1  ;;  %v147_v3 = vld [vmem:[%s193_s0] sm:$0xff]  }
   0x3   :  { %137 = vmatprep.subr.bf16.mxu0 %v152_v0  ;;  %v123_v4 = vld [vmem:[%s194_s2] ss:$0 sm:$0xff] }
   0x6   :  { %138 = vmatpush3.bf16.msra.mxu0 %v146_v2 }
   0x9   :  { %140 = vmatmul.mubr.msk.bf16.vlgmr.msra.gmra.mxu0 %vm45_vm1, %v147_v3 }
  0xc9   :  { %v83_v5 = vpop.f32.mrf.mxu0 }
  0xca   :  { %v84_v6 = vadd.f32 %v123_v4, %v83_v5 }
  0xcb   :  { %v141_v7 = vpop.f32.mrf.mxu0 }
  0xcc   :  { %v92_v8 = vmul.f32 0.044715, %v84_v6  ;;  %v90_v22 = vmul.f32 0.5, %v84_v6 }
  0xcd   :  { %v86_v9 = vpop.f32.mrf.mxu0 }
  0xce   :  { %v94_v10 = vmul.f32 %v92_v8, %v84_v6  ;;  %v87_v11 = vadd.f32 %v123_v4, %v86_v9 }
  0xcf   :  { %v142_v12 = vpop.f32.mrf.mxu0 }
  0xd0   :  { %v96_v13 = vmul.f32 %v94_v10, %v84_v6  ;;  %v93_v14 = vmul.f32 0.044715, %v87_v11  ;;  %v91_v27 = vmul.f32 0.5, %v87_v11 }
  0xd2   :  { %v98_v15 = vadd.f32 %v96_v13, %v84_v6  ;;  %v95_v16 = vmul.f32 %v93_v14, %v87_v11 }
  0xd4   :  { %v100_v17 = vmul.f32 0.7978846, %v98_v15  ;;  %v97_v18 = vmul.f32 %v95_v16, %v87_v11 }
  0xd6   :  { %148 = vtanh.f32 %v100_v17  ;;  %v99_v19 = vadd.f32 %v97_v18, %v87_v11 }
  0xd8   :  { %v101_v20 = vmul.f32 0.7978846, %v99_v19 }
  0xda   :  { %150 = vtanh.f32 %v101_v20 }
  0xe3   :  { %v149_v21 = vpop.eup %148 }
  0xe4   :  { %v104_v23 = vadd.f32 1.0, %v149_v21 }
  0xe6   :  { %v106_v24 = vmul.f32 %v104_v23, %v90_v22 }
  0xe7   :  { %v151_v25 = vpop.eup %150 }
  0xe8   :  { %v130_v26 = vpack.c.bf16 %v106_v24, %v106_v24  ;;  %v105_v28 = vadd.f32 1.0, %v151_v25 }
  0xea   :  { %117 = vst.msk [vmem:[%s195_s3] sm:$0xf] %vm116_vm2, %v130_v26  ;;  %v107_v29 = vmul.f32 %v105_v28, %v91_v27 }
  0xec   :  { %v131_v30 = vpack.c.bf16 %v107_v29, %v107_v29 }
  0xee   :  { %118 = vst.msk [vmem:[%s195_s3 + $0x4] sm:$0xf] %vm116_vm2, %v131_v30 }

// kernel: kobert_classifier_forward.15
= control target key start
LH: loop header
LB: loop body
LE: loop exit
PB: predicated region body
PF: predicated region fallthrough
CT: control target
= control target key end

     0   :  { %v156_v0 = vmov 0.0   ;;  %vm157_vm0 = vmmov 0   ;;  %vm61_vm1 = vcmask 523264   ;;  %vm114_vm2 = vcmask 257024   ;;  %s202_s1 = inlined_call_operand.vmem [shape: bf16[64,32], index: 1, kind: input, shape index: {}]   ;;  %s203_s0 = inlined_call_operand.vmem [shape: bf16[16,64], index: 0, kind: input, shape index: {}]   ;;  %s204_s2 = inlined_call_operand.vmem [shape: f32[1,32], index: 2, kind: input, shape index: {}]   ;;  %s205_s3 = inlined_call_operand.vmem [shape: bf16[16,32], index: 3, kind: output, shape index: {}]  }
   0x1   :  { %137 = vmatprep.subr.bf16.mxu0 %v156_v0  ;;  %v151_v1 = vld [vmem:[%s202_s1 + $0x18] sm:$0xff]   ;;  %145 = vmatprep.mubr.msk.bf16.mxu0 %vm157_vm0, %v156_v0  ;;  %v152_v2 = vld [vmem:[%s202_s1 + $0x10] sm:$0xff]   ;;  %v153_v3 = vld [vmem:[%s202_s1 + $0x8] sm:$0xff]  }
   0x2   :  { %138 = vmatpush3.bf16.msra.mxu0 %v151_v1  ;;  %v154_v4 = vld [vmem:[%s202_s1] sm:$0xff]  }
   0x3   :  { %139 = vmatprep.subr.bf16.mxu0 %v156_v0  ;;  %v155_v5 = vld [vmem:[%s203_s0] sm:$0xff]  }
   0x4   :  { %v121_v6 = vld [vmem:[%s204_s2] ss:$0 sm:$0xff] }
   0x6   :  { %140 = vmatpush3.bf16.msra.mxu0 %v152_v2 }
   0x7   :  { %141 = vmatprep.subr.bf16.mxu0 %v156_v0 }
   0xa   :  { %142 = vmatpush3.bf16.msra.mxu0 %v153_v3 }
   0xb   :  { %143 = vmatprep.subr.bf16.mxu0 %v156_v0 }
   0xe   :  { %144 = vmatpush3.bf16.msra.mxu0 %v154_v4 }
  0x11   :  { %146 = vmatmul.mubr.msk.bf16.vlgmr.msra.gmra.mxu0 %vm61_vm1, %v155_v5 }
  0xd1   :  { %v99_v7 = vpop.f32.mrf.mxu0 }
  0xd2   :  { %v100_v8 = vadd.f32 %v121_v6, %v99_v7 }
  0xd3   :  { %v147_v9 = vpop.f32.mrf.mxu0 }
  0xd4   :  { %v130_v10 = vpack.c.bf16 %v100_v8, %v100_v8 }
  0xd5   :  { %v102_v11 = vpop.f32.mrf.mxu0 }
  0xd6   :  { %115 = vst.msk [vmem:[%s205_s3] sm:$0xf] %vm114_vm2, %v130_v10  ;;  %v103_v12 = vadd.f32 %v121_v6, %v102_v11 }
  0xd7   :  { %v148_v13 = vpop.f32.mrf.mxu0 }
  0xd8   :  { %v131_v14 = vpack.c.bf16 %v103_v12, %v103_v12 }
  0xda   :  { %116 = vst.msk [vmem:[%s205_s3 + $0x4] sm:$0xf] %vm114_vm2, %v131_v14 }

// kernel: kobert_classifier_forward.17
= control target key start
LH: loop header
LB: loop body
LE: loop exit
PB: predicated region body
PF: predicated region fallthrough
CT: control target
= control target key end

     0   :  { %v235_v1 = vmov 0.0   ;;  %vm236_vm0 = vmmov 0   ;;  %s294_s0 = inlined_call_operand.vmem [shape: bf16[2,32], index: 0, kind: input, shape index: {}]   ;;  %s295_s1 = inlined_call_operand.vmem [shape: bf16[32,32], index: 1, kind: input, shape index: {}]   ;;  %s296_s2 = inlined_call_operand.vmem [shape: f32[1,32], index: 2, kind: input, shape index: {}]   ;;  %s297_s3 = inlined_call_operand.vmem [shape: bf16[32,4], index: 3, kind: input, shape index: {}]   ;;  %s298_s4 = inlined_call_operand.vmem [shape: f32[1,4], index: 4, kind: input, shape index: {}]   ;;  %s299_s5 = inlined_call_operand.hbm [shape: f32[2,4], index: 5, kind: output, shape index: {}]  }
   0x1   :  { %v207_v0 = vld [vmem:[%s295_s1 + $0x8] sm:$0xff]   ;;  %188 = vmatprep.subr.bf16.mxu0 %v235_v1  ;;  %196 = vmatprep.subr.bf16.mxu1 %v235_v1  ;;  %v208_v2 = vld [vmem:[%s295_s1] sm:$0xff]  }
   0x2   :  { %189 = vmatpush3.bf16.msra.mxu0 %v207_v0  ;;  %192 = vmatprep.mubr.msk.bf16.mxu0 %vm236_vm0, %v235_v1 }
   0x3   :  { %190 = vmatprep.subr.bf16.mxu0 %v235_v1  ;;  %200 = vmatprep.mubr.msk.bf16.mxu1 %vm236_vm0, %v235_v1 }
   0x4   :  { %10 = vsyncpa [#allocation3], 0  ;;  %v22_v3 = vld [vmem:[%s294_s0] sm:$0x1]  ;;  %vm46_vm1 = vcmask 261120   ;;  %v209_v4 = vld [vmem:[%s297_s3 + $0x8] sm:$0xff]  }
   0x5   :  { %197 = vmatpush3.bf16.msra.mxu1 %v209_v4  ;;  %v210_v5 = vld [vmem:[%s297_s3] sm:$0xff]   ;;  %s237_s3 = smov [#allocation2]   ;;  %vm158_vm2 = vcmask 25600  }
   0x6   :  { %191 = vmatpush3.bf16.msra.mxu0 %v208_v2  ;;  %198 = vmatprep.subr.bf16.mxu1 %v235_v1  ;;  %v174_v6 = vld [vmem:[%s296_s2] ss:$0 sm:$0xff]  ;;  %s166_s30 = sshll.u32 %s237_s3, 4  ;;  %s167_s30 = int_to_ptr.vmem [resolvable:$true] %s166_s30 }
   0x7   :  { %v178_v14 = vld [vmem:[%s298_s4] ss:$0 sm:$0xff]  ;;  %s213_s2 = scalar_lea.vmem %s167_s30, 32  ;;  %p218_p1 = scmp.lt.s32.totalorder %s167_s30, %s167_s30 }
   0x8   :  { %p214_p0 = scmp.ne.s32.totalorder %s167_s30, %s213_s2  ;;  %p219_p2 = scmp.lt.s32.totalorder %s213_s2, %s213_s2 }
   0x9   :  { %193 = vmatmul.mubr.msk.bf16.vlgmr.msra.gmra.mxu0 %vm46_vm1, %v22_v3  ;;  %199 = vmatpush3.bf16.msra.mxu1 %v210_v5 }
   0xa   :  { %p220_p3 = por %p219_p2, %p218_p1 }
   0xc   :  { %p221_p4 = pnand %p220_p3, %p214_p0 }
  0xc9   :  { %v84_v7 = vpop.f32.mrf.mxu0 }
  0xca   :  { %v85_v8 = vadd.f32 %v174_v6, %v84_v7 }
  0xcb   :  { %v194_v9 = vpop.f32.mrf.mxu0 }
  0xcc   :  { %211 = vtanh.f32 %v85_v8 }
  0xcd   :  { %v87_v10 = vpop.f32.mrf.mxu0 }
  0xcf   :  { %v195_v11 = vpop.f32.mrf.mxu0 }
  0xd9   :  { %v212_v12 = vpop.eup %211 }
  0xda   :  { %v91_v13 = vpack.c.bf16 %v212_v12, %v212_v12 }
  0xdc   :  { %201 = vmatmul.mubr.msk.bf16.vlgmr.msra.gmra.mxu1 %vm46_vm1, %v91_v13 }
 0x19c   :  { %v152_v15 = vpop.f32.mrf.mxu1 }
 0x19d   :  { %v153_v16 = vadd.f32 %v178_v14, %v152_v15 }
 0x19e   :  { %v202_v17 = vpop.f32.mrf.mxu1 }
 0x19f   :  { %159 = vst.msk [vmem:[#allocation2] sm:$0x3] %vm158_vm2, %v153_v16 }
 0x1a0   :  { %v155_v18 = vpop.f32.mrf.mxu1 }
 0x1a1   :  { %224 = shalt.err (!%p221_p4)
}
 0x1a2   :  { %169 = dma.vmem_to_hbm [thread:$0]  %s167_s30, 32, %s299_s5, [#allocation3]   ;;  %v203_v19 = vpop.f32.mrf.mxu1 }
 0x1a3   :  { %233 = dma.done.wait [#allocation3], 32  }
 0x1a4   :  { %234 = vsyncadd [#allocation3], 4294967264 }
 0x1a5   :  { %173 = vsyncpa [#allocation3], 1 }

</bundles_post_ra>
